<compile_context>
chip_gen: v7x
topology: tpu7x:2x2x1
jax: 0.10.0
libtpu: 0.0.40
codegen_flags: <defaults>
</compile_context>

<pallas_src>
import functools

import jax
import jax.numpy as jnp
from jax.experimental import pallas as pl
from jax.experimental.pallas import tpu as pltpu

_EPS = 1e-5
_VMEM_LIMIT = 64 * 1024 * 1024


def _cparams():
    return pltpu.CompilerParams(
        dimension_semantics=("parallel",),
        vmem_limit_bytes=_VMEM_LIMIT,
    )


def _prep_rows(m, cap=512):
    """Pick a row tile (multiple of 16 for bf16 sublane packing) dividing m; else pad."""
    for t in (1024, 512, 256, 128, 64, 32, 16):
        if t <= cap and m % t == 0:
            return t, m
    t = min(cap, 256)
    return t, pl.cdiv(m, t) * t


# ---------------------------------------------------------------------------
# Pallas kernels: fused (conv-as-matmul) * bn_scale + bn_bias [+ residual][+relu]
# ---------------------------------------------------------------------------
def _mm_bn_act_kernel(x_ref, w_ref, s_ref, b_ref, o_ref, *, relu):
    y = jnp.dot(x_ref[...], w_ref[...], preferred_element_type=jnp.float32)
    y = y * s_ref[...] + b_ref[...]
    if relu:
        y = jnp.maximum(y, 0.0)
    o_ref[...] = y.astype(o_ref.dtype)


def _mm_bn_add_relu_kernel(x_ref, w_ref, s_ref, b_ref, r_ref, o_ref):
    y = jnp.dot(x_ref[...], w_ref[...], preferred_element_type=jnp.float32)
    y = y * s_ref[...] + b_ref[...] + r_ref[...].astype(jnp.float32)
    o_ref[...] = jnp.maximum(y, 0.0).astype(o_ref.dtype)


def _mm_bn_shortcut_relu_kernel(x_ref, w_ref, s_ref, b_ref,
                                xs_ref, ws_ref, ss_ref, bs_ref, o_ref):
    y = jnp.dot(x_ref[...], w_ref[...], preferred_element_type=jnp.float32)
    y = y * s_ref[...] + b_ref[...]
    r = jnp.dot(xs_ref[...], ws_ref[...], preferred_element_type=jnp.float32)
    r = r * ss_ref[...] + bs_ref[...]
    o_ref[...] = jnp.maximum(y + r, 0.0).astype(o_ref.dtype)


# ---------------------------------------------------------------------------
# pallas_call wrappers
# ---------------------------------------------------------------------------
def matmul_bn_act(x, w, scale, bias, *, relu, out_dtype=jnp.bfloat16, tm_cap=512):
    """act((x @ w) * scale + bias); grid over row tiles of the pixel matrix."""
    m, k = x.shape
    nc = w.shape[1]
    tm, mp = _prep_rows(m, tm_cap)
    if mp != m:
        x = jnp.pad(x, ((0, mp - m), (0, 0)))
    out = pl.pallas_call(
        functools.partial(_mm_bn_act_kernel, relu=relu),
        out_shape=jax.ShapeDtypeStruct((mp, nc), out_dtype),
        grid=(mp // tm,),
        in_specs=[
            pl.BlockSpec((tm, k), lambda i: (i, 0)),
            pl.BlockSpec((k, nc), lambda i: (0, 0)),
            pl.BlockSpec((1, nc), lambda i: (0, 0)),
            pl.BlockSpec((1, nc), lambda i: (0, 0)),
        ],
        out_specs=pl.BlockSpec((tm, nc), lambda i: (i, 0)),
        compiler_params=_cparams(),
    )(x, w, scale, bias)
    return out if mp == m else out[:m]


def matmul_bn_add_relu(x, w, scale, bias, res, *, out_dtype=jnp.float32, tm_cap=512):
    """relu((x @ w) * scale + bias + res) — final stage, identity shortcut."""
    m, k = x.shape
    nc = w.shape[1]
    tm, mp = _prep_rows(m, tm_cap)
    if mp != m:
        x = jnp.pad(x, ((0, mp - m), (0, 0)))
        res = jnp.pad(res, ((0, mp - m), (0, 0)))
    out = pl.pallas_call(
        _mm_bn_add_relu_kernel,
        out_shape=jax.ShapeDtypeStruct((mp, nc), out_dtype),
        grid=(mp // tm,),
        in_specs=[
            pl.BlockSpec((tm, k), lambda i: (i, 0)),
            pl.BlockSpec((k, nc), lambda i: (0, 0)),
            pl.BlockSpec((1, nc), lambda i: (0, 0)),
            pl.BlockSpec((1, nc), lambda i: (0, 0)),
            pl.BlockSpec((tm, nc), lambda i: (i, 0)),
        ],
        out_specs=pl.BlockSpec((tm, nc), lambda i: (i, 0)),
        compiler_params=_cparams(),
    )(x, w, scale, bias, res)
    return out if mp == m else out[:m]


def matmul_bn_shortcut_relu(x, w, scale, bias, xs, ws, ss, bs,
                            *, out_dtype=jnp.float32, tm_cap=512):
    """relu((x@w)*scale+bias + (xs@ws)*ss+bs) — final stage, fused projection shortcut."""
    m, k = x.shape
    nc = w.shape[1]
    ks = xs.shape[1]
    tm, mp = _prep_rows(m, tm_cap)
    if mp != m:
        x = jnp.pad(x, ((0, mp - m), (0, 0)))
        xs = jnp.pad(xs, ((0, mp - m), (0, 0)))
    out = pl.pallas_call(
        _mm_bn_shortcut_relu_kernel,
        out_shape=jax.ShapeDtypeStruct((mp, nc), out_dtype),
        grid=(mp // tm,),
        in_specs=[
            pl.BlockSpec((tm, k), lambda i: (i, 0)),
            pl.BlockSpec((k, nc), lambda i: (0, 0)),
            pl.BlockSpec((1, nc), lambda i: (0, 0)),
            pl.BlockSpec((1, nc), lambda i: (0, 0)),
            pl.BlockSpec((tm, ks), lambda i: (i, 0)),
            pl.BlockSpec((ks, nc), lambda i: (0, 0)),
            pl.BlockSpec((1, nc), lambda i: (0, 0)),
            pl.BlockSpec((1, nc), lambda i: (0, 0)),
        ],
        out_specs=pl.BlockSpec((tm, nc), lambda i: (i, 0)),
        compiler_params=_cparams(),
    )(x, w, scale, bias, xs, ws, ss, bs)
    return out if mp == m else out[:m]


# ---------------------------------------------------------------------------
# JAX glue: BN folding, im2col, parameter init, module forward
# ---------------------------------------------------------------------------
def fold_bn(conv_b, gamma, beta, mean, var):
    scale = gamma / jnp.sqrt(var + _EPS)
    bias = (conv_b - mean) * scale + beta
    return scale[None, :], bias[None, :]


def im2col_3x3(x, stride):
    """x: (N,H,W,C) -> patches (N,Ho,Wo,9*C) ordered (kh, kw, c); pad=1. Keeps dtype (bf16)."""
    n, h, w, c = x.shape
    xp = jnp.pad(x, ((0, 0), (1, 1), (1, 1), (0, 0)))
    ho = (h + 2 - 3) // stride + 1
    wo = (w + 2 - 3) // stride + 1
    cols = []
    for dh in range(3):
        for dw in range(3):
            cols.append(
                xp[:, dh : dh + stride * (ho - 1) + 1 : stride,
                      dw : dw + stride * (wo - 1) + 1 : stride, :]
            )
    return jnp.concatenate(cols, axis=-1), ho, wo


def init_params(key, c_in, c_out, stride):
    keys = jax.random.split(key, 12)

    def conv_w(k, o, i, kh, kw):
        return jax.random.normal(k, (o, i, kh, kw), jnp.float32) / jnp.sqrt(i * kh * kw)

    def bn_p(k, c):
        k1, k2, k3 = jax.random.split(k, 3)
        gamma = 1.0 + 0.1 * jax.random.normal(k1, (c,), jnp.float32)
        beta = 0.1 * jax.random.normal(k2, (c,), jnp.float32)
        mean = 0.1 * jax.random.normal(k3, (c,), jnp.float32)
        var = jnp.ones((c,), jnp.float32)
        return gamma, beta, mean, var

    c4 = 4 * c_out
    p = {
        "w1": conv_w(keys[0], c_out, c_in, 1, 1),
        "b1": 0.1 * jax.random.normal(keys[1], (c_out,), jnp.float32),
        "bn1": bn_p(keys[2], c_out),
        "w2": conv_w(keys[3], c_out, c_out, 3, 3),
        "b2": 0.1 * jax.random.normal(keys[4], (c_out,), jnp.float32),
        "bn2": bn_p(keys[5], c_out),
        "w3": conv_w(keys[6], c4, c_out, 1, 1),
        "b3": 0.1 * jax.random.normal(keys[7], (c4,), jnp.float32),
        "bn3": bn_p(keys[8], c4),
    }
    if (stride != 1) or (c_in != c4):
        p["ws"] = conv_w(keys[9], c4, c_in, 1, 1)
        p["bs"] = 0.1 * jax.random.normal(keys[10], (c4,), jnp.float32)
        p["bns"] = bn_p(keys[11], c4)
    return p


def bottleneck_forward(x_nchw, p, stride):
    # TODO(synk): if chained in a full ResNet, keep NHWC between blocks and only
    # transpose NCHW<->NHWC at the network boundary.
    x = jnp.transpose(x_nchw, (0, 2, 3, 1)).astype(jnp.float32)  # NHWC
    n, h, w, c_in = x.shape
    c1 = p["w1"].shape[0]
    c4 = p["w3"].shape[0]
    x_bf = x.astype(jnp.bfloat16)

    # stage 1: 1x1 conv + BN + ReLU (fused kernel, bf16 in / bf16 out, f32 accum)
    w1 = jnp.transpose(p["w1"][:, :, 0, 0]).astype(jnp.bfloat16)   # (Cin, C1)
    s1, b1 = fold_bn(p["b1"], *p["bn1"])
    y1 = matmul_bn_act(x_bf.reshape(-1, c_in), w1, s1, b1, relu=True,
                       out_dtype=jnp.bfloat16).reshape(n, h, w, c1)

    # stage 2: 3x3 conv (stride, pad=1) + BN + ReLU via bf16 im2col + fused matmul
    patches, ho, wo = im2col_3x3(y1, stride)                       # bf16
    w2 = jnp.transpose(p["w2"], (2, 3, 1, 0)).reshape(9 * c1, c1).astype(jnp.bfloat16)
    s2, b2 = fold_bn(p["b2"], *p["bn2"])
    y2 = matmul_bn_act(patches.reshape(-1, 9 * c1), w2, s2, b2, relu=True,
                       out_dtype=jnp.bfloat16)

    # stage 3: 1x1 conv + BN + residual + ReLU, shortcut matmul fused in-kernel
    w3 = jnp.transpose(p["w3"][:, :, 0, 0]).astype(jnp.bfloat16)   # (C1, C4)
    s3, b3 = fold_bn(p["b3"], *p["bn3"])
    if "ws" in p:
        xs = x_bf[:, ::stride, ::stride, :].reshape(-1, c_in)      # strided 1x1 shortcut input
        ws = jnp.transpose(p["ws"][:, :, 0, 0]).astype(jnp.bfloat16)
        ss, bs = fold_bn(p["bs"], *p["bns"])
        out = matmul_bn_shortcut_relu(y2, w3, s3, b3, xs, ws, ss, bs,
                                      out_dtype=jnp.float32)
    else:
        res = x_bf.reshape(-1, c_in)                               # identity (Cin == C4)
        out = matmul_bn_add_relu(y2, w3, s3, b3, res, out_dtype=jnp.float32)

    return jnp.transpose(out.reshape(n, ho, wo, c4), (0, 3, 1, 2))  # NCHW


# ---------------------------------------------------------------------------
# Pure-JAX reference (NCHW, lax.conv, f32) for correctness checking
# ---------------------------------------------------------------------------
def ref_forward(x, p, stride):
    def conv(x, w, b, s=1, pad=0):
        y = jax.lax.conv_general_dilated(
            x, w, (s, s), [(pad, pad), (pad, pad)],
            dimension_numbers=("NCHW", "OIHW", "NCHW"),
            precision=jax.lax.Precision.HIGHEST)
        return y + b[None, :, None, None]

    def bn(x, prm):
        g, be, m, v = prm
        return (x - m[None, :, None, None]) / jnp.sqrt(v[None, :, None, None] + _EPS) \
            * g[None, :, None, None] + be[None, :, None, None]

    relu = lambda t: jnp.maximum(t, 0.0)
    y = relu(bn(conv(x, p["w1"], p["b1"]), p["bn1"]))
    y = relu(bn(conv(y, p["w2"], p["b2"], s=stride, pad=1), p["bn2"]))
    y = bn(conv(y, p["w3"], p["b3"]), p["bn3"])
    sc = bn(conv(x, p["ws"], p["bs"], s=stride), p["bns"]) if "ws" in p else x
    return relu(y + sc)


if __name__ == "__main__":
    IN_C, OUT_C, STRIDE = 16, 8, 2
    key = jax.random.PRNGKey(0)
    k_x, k_p = jax.random.split(key)
    x = jax.random.normal(k_x, (2, IN_C, 16, 16), jnp.float32)
    params = init_params(k_p, IN_C, OUT_C, STRIDE)

    fwd = jax.jit(bottleneck_forward, static_argnames=("stride",))
    out = jax.block_until_ready(fwd(x, params, stride=STRIDE))
    assert out.shape == (2, 4 * OUT_C, 8, 8), out.shape

    ref = ref_forward(x, params, STRIDE)
    # bf16 MXU operands (f32 accumulation) vs. an f32 reference: loosened tolerance.
    assert jnp.allclose(out, ref, atol=1e-1, rtol=5e-2), float(jnp.max(jnp.abs(out - ref)))

    print("KERNEL_OK")
</pallas_src>

<mosaic_0001>
module attributes {stable_mosaic.version = 11 : i64} {
  func.func @_mm_bn_act_kernel(%arg0: i32, %arg1: memref<512x16xbf16, #tpu.memory_space<vmem>>, %arg2: memref<16x8xbf16, #tpu.memory_space<vmem>>, %arg3: memref<1x8xf32, #tpu.memory_space<vmem>>, %arg4: memref<1x8xf32, #tpu.memory_space<vmem>>, %arg5: memref<512x8xbf16, #tpu.memory_space<vmem>>) attributes {dimension_semantics = [#tpu.dimension_semantics<parallel>], iteration_bounds = array<i64: 1>, scalar_prefetch = 0 : i64, scratch_operands = 0 : i64, tpu.core_type = #tpu.core_type<tc>, window_params = [{transform_indices = @transform_0, window_bounds = array<i64: 512, 16>}, {pipeline_mode = #tpu.pipeline_mode<synchronous>, transform_indices = @transform_1, window_bounds = array<i64: 16, 8>}, {pipeline_mode = #tpu.pipeline_mode<synchronous>, transform_indices = @transform_2, window_bounds = array<i64: 1, 8>}, {pipeline_mode = #tpu.pipeline_mode<synchronous>, transform_indices = @transform_3, window_bounds = array<i64: 1, 8>}, {transform_indices = @transform_4, window_bounds = array<i64: 512, 8>}]} {
    %c0 = arith.constant 0 : index
    %c0_0 = arith.constant 0 : index
    %0 = vector.load %arg1[%c0, %c0_0] : memref<512x16xbf16, #tpu.memory_space<vmem>>, vector<512x16xbf16>
    %c0_1 = arith.constant 0 : index
    %c0_2 = arith.constant 0 : index
    %1 = vector.load %arg2[%c0_1, %c0_2] : memref<16x8xbf16, #tpu.memory_space<vmem>>, vector<16x8xbf16>
    %cst = arith.constant dense<0.000000e+00> : vector<512x8xf32>
    %2 = tpu.matmul %0, %1, %cst {dimension_numbers = #tpu.dot_dimension_numbers<[1], [0], [0], [1], [0, 0, 1, 1], [], []>} : vector<512x16xbf16>, vector<16x8xbf16>, vector<512x8xf32> -> vector<512x8xf32>
    %c0_3 = arith.constant 0 : index
    %c0_4 = arith.constant 0 : index
    %3 = vector.load %arg3[%c0_3, %c0_4] : memref<1x8xf32, #tpu.memory_space<vmem>>, vector<1x8xf32>
    %4 = vector.broadcast %3 : vector<1x8xf32> to vector<512x8xf32>
    %5 = arith.mulf %2, %4 : vector<512x8xf32>
    %c0_5 = arith.constant 0 : index
    %c0_6 = arith.constant 0 : index
    %6 = vector.load %arg4[%c0_5, %c0_6] : memref<1x8xf32, #tpu.memory_space<vmem>>, vector<1x8xf32>
    %7 = vector.broadcast %6 : vector<1x8xf32> to vector<512x8xf32>
    %8 = arith.addf %5, %7 : vector<512x8xf32>
    %cst_7 = arith.constant 0.000000e+00 : f32
    %9 = vector.broadcast %cst_7 : f32 to vector<512x8xf32>
    %10 = arith.maximumf %8, %9 : vector<512x8xf32>
    %11 = arith.truncf %10 : vector<512x8xf32> to vector<512x8xbf16>
    %c0_8 = arith.constant 0 : index
    %c0_9 = arith.constant 0 : index
    %12 = vector.load %arg5[%c0_8, %c0_9] : memref<512x8xbf16, #tpu.memory_space<vmem>>, vector<512x8xbf16>
    tpu.vector_store %arg5[%c0_8, %c0_9], %11 {strides = array<i32>} : memref<512x8xbf16, #tpu.memory_space<vmem>>, vector<512x8xbf16>,
    return
  }
  func.func @transform_0(%arg0: i32) -> (i32, i32) {
    %c0_i32 = arith.constant 0 : i32
    %c0_i32_0 = arith.constant 0 : i32
    return %arg0, %c0_i32 : i32, i32
  }
  func.func @transform_1(%arg0: i32) -> (i32, i32) {
    %c0_i32 = arith.constant 0 : i32
    %c0_i32_0 = arith.constant 0 : i32
    %c0_i32_1 = arith.constant 0 : i32
    return %c0_i32, %c0_i32_0 : i32, i32
  }
  func.func @transform_2(%arg0: i32) -> (i32, i32) {
    %c0_i32 = arith.constant 0 : i32
    %c0_i32_0 = arith.constant 0 : i32
    %c0_i32_1 = arith.constant 0 : i32
    return %c0_i32, %c0_i32_0 : i32, i32
  }
  func.func @transform_3(%arg0: i32) -> (i32, i32) {
    %c0_i32 = arith.constant 0 : i32
    %c0_i32_0 = arith.constant 0 : i32
    %c0_i32_1 = arith.constant 0 : i32
    return %c0_i32, %c0_i32_0 : i32, i32
  }
  func.func @transform_4(%arg0: i32) -> (i32, i32) {
    %c0_i32 = arith.constant 0 : i32
    %c0_i32_0 = arith.constant 0 : i32
    return %arg0, %c0_i32 : i32, i32
  }
}

module attributes {stable_mosaic.version = 11 : i64} {
  func.func @_mm_bn_shortcut_relu_kernel(%arg0: i32, %arg1: memref<128x8xbf16, #tpu.memory_space<vmem>>, %arg2: memref<8x32xbf16, #tpu.memory_space<vmem>>, %arg3: memref<1x32xf32, #tpu.memory_space<vmem>>, %arg4: memref<1x32xf32, #tpu.memory_space<vmem>>, %arg5: memref<128x16xbf16, #tpu.memory_space<vmem>>, %arg6: memref<16x32xbf16, #tpu.memory_space<vmem>>, %arg7: memref<1x32xf32, #tpu.memory_space<vmem>>, %arg8: memref<1x32xf32, #tpu.memory_space<vmem>>, %arg9: memref<128x32xf32, #tpu.memory_space<vmem>>) attributes {dimension_semantics = [#tpu.dimension_semantics<parallel>], iteration_bounds = array<i64: 1>, scalar_prefetch = 0 : i64, scratch_operands = 0 : i64, tpu.core_type = #tpu.core_type<tc>, window_params = [{transform_indices = @transform_0, window_bounds = array<i64: 128, 8>}, {pipeline_mode = #tpu.pipeline_mode<synchronous>, transform_indices = @transform_1, window_bounds = array<i64: 8, 32>}, {pipeline_mode = #tpu.pipeline_mode<synchronous>, transform_indices = @transform_2, window_bounds = array<i64: 1, 32>}, {pipeline_mode = #tpu.pipeline_mode<synchronous>, transform_indices = @transform_3, window_bounds = array<i64: 1, 32>}, {transform_indices = @transform_4, window_bounds = array<i64: 128, 16>}, {pipeline_mode = #tpu.pipeline_mode<synchronous>, transform_indices = @transform_5, window_bounds = array<i64: 16, 32>}, {pipeline_mode = #tpu.pipeline_mode<synchronous>, transform_indices = @transform_6, window_bounds = array<i64: 1, 32>}, {pipeline_mode = #tpu.pipeline_mode<synchronous>, transform_indices = @transform_7, window_bounds = array<i64: 1, 32>}, {transform_indices = @transform_8, window_bounds = array<i64: 128, 32>}]} {
    %c0 = arith.constant 0 : index
    %c0_0 = arith.constant 0 : index
    %0 = vector.load %arg1[%c0, %c0_0] : memref<128x8xbf16, #tpu.memory_space<vmem>>, vector<128x8xbf16>
    %c0_1 = arith.constant 0 : index
    %c0_2 = arith.constant 0 : index
    %1 = vector.load %arg2[%c0_1, %c0_2] : memref<8x32xbf16, #tpu.memory_space<vmem>>, vector<8x32xbf16>
    %cst = arith.constant dense<0.000000e+00> : vector<128x32xf32>
    %2 = tpu.matmul %0, %1, %cst {dimension_numbers = #tpu.dot_dimension_numbers<[1], [0], [0], [1], [0, 0, 1, 1], [], []>} : vector<128x8xbf16>, vector<8x32xbf16>, vector<128x32xf32> -> vector<128x32xf32>
    %c0_3 = arith.constant 0 : index
    %c0_4 = arith.constant 0 : index
    %3 = vector.load %arg3[%c0_3, %c0_4] : memref<1x32xf32, #tpu.memory_space<vmem>>, vector<1x32xf32>
    %4 = vector.broadcast %3 : vector<1x32xf32> to vector<128x32xf32>
    %5 = arith.mulf %2, %4 : vector<128x32xf32>
    %c0_5 = arith.constant 0 : index
    %c0_6 = arith.constant 0 : index
    %6 = vector.load %arg4[%c0_5, %c0_6] : memref<1x32xf32, #tpu.memory_space<vmem>>, vector<1x32xf32>
    %7 = vector.broadcast %6 : vector<1x32xf32> to vector<128x32xf32>
    %8 = arith.addf %5, %7 : vector<128x32xf32>
    %c0_7 = arith.constant 0 : index
    %c0_8 = arith.constant 0 : index
    %9 = vector.load %arg5[%c0_7, %c0_8] : memref<128x16xbf16, #tpu.memory_space<vmem>>, vector<128x16xbf16>
    %c0_9 = arith.constant 0 : index
    %c0_10 = arith.constant 0 : index
    %10 = vector.load %arg6[%c0_9, %c0_10] : memref<16x32xbf16, #tpu.memory_space<vmem>>, vector<16x32xbf16>
    %cst_11 = arith.constant dense<0.000000e+00> : vector<128x32xf32>
    %11 = tpu.matmul %9, %10, %cst_11 {dimension_numbers = #tpu.dot_dimension_numbers<[1], [0], [0], [1], [0, 0, 1, 1], [], []>} : vector<128x16xbf16>, vector<16x32xbf16>, vector<128x32xf32> -> vector<128x32xf32>
    %c0_12 = arith.constant 0 : index
    %c0_13 = arith.constant 0 : index
    %12 = vector.load %arg7[%c0_12, %c0_13] : memref<1x32xf32, #tpu.memory_space<vmem>>, vector<1x32xf32>
    %13 = vector.broadcast %12 : vector<1x32xf32> to vector<128x32xf32>
    %14 = arith.mulf %11, %13 : vector<128x32xf32>
    %c0_14 = arith.constant 0 : index
    %c0_15 = arith.constant 0 : index
    %15 = vector.load %arg8[%c0_14, %c0_15] : memref<1x32xf32, #tpu.memory_space<vmem>>, vector<1x32xf32>
    %16 = vector.broadcast %15 : vector<1x32xf32> to vector<128x32xf32>
    %17 = arith.addf %14, %16 : vector<128x32xf32>
    %18 = arith.addf %8, %17 : vector<128x32xf32>
    %cst_16 = arith.constant 0.000000e+00 : f32
    %19 = vector.broadcast %cst_16 : f32 to vector<128x32xf32>
    %20 = arith.maximumf %18, %19 : vector<128x32xf32>
    %c0_17 = arith.constant 0 : index
    %c0_18 = arith.constant 0 : index
    %21 = vector.load %arg9[%c0_17, %c0_18] : memref<128x32xf32, #tpu.memory_space<vmem>>, vector<128x32xf32>
    tpu.vector_store %arg9[%c0_17, %c0_18], %20 {strides = array<i32>} : memref<128x32xf32, #tpu.memory_space<vmem>>, vector<128x32xf32>,
    return
  }
  func.func @transform_0(%arg0: i32) -> (i32, i32) {
    %c0_i32 = arith.constant 0 : i32
    %c0_i32_0 = arith.constant 0 : i32
    return %arg0, %c0_i32 : i32, i32
  }
  func.func @transform_1(%arg0: i32) -> (i32, i32) {
    %c0_i32 = arith.constant 0 : i32
    %c0_i32_0 = arith.constant 0 : i32
    %c0_i32_1 = arith.constant 0 : i32
    return %c0_i32, %c0_i32_0 : i32, i32
  }
  func.func @transform_2(%arg0: i32) -> (i32, i32) {
    %c0_i32 = arith.constant 0 : i32
    %c0_i32_0 = arith.constant 0 : i32
    %c0_i32_1 = arith.constant 0 : i32
    return %c0_i32, %c0_i32_0 : i32, i32
  }
  func.func @transform_3(%arg0: i32) -> (i32, i32) {
    %c0_i32 = arith.constant 0 : i32
    %c0_i32_0 = arith.constant 0 : i32
    %c0_i32_1 = arith.constant 0 : i32
    return %c0_i32, %c0_i32_0 : i32, i32
  }
  func.func @transform_4(%arg0: i32) -> (i32, i32) {
    %c0_i32 = arith.constant 0 : i32
    %c0_i32_0 = arith.constant 0 : i32
    return %arg0, %c0_i32 : i32, i32
  }
  func.func @transform_5(%arg0: i32) -> (i32, i32) {
    %c0_i32 = arith.constant 0 : i32
    %c0_i32_0 = arith.constant 0 : i32
    %c0_i32_1 = arith.constant 0 : i32
    return %c0_i32, %c0_i32_0 : i32, i32
  }
  func.func @transform_6(%arg0: i32) -> (i32, i32) {
    %c0_i32 = arith.constant 0 : i32
    %c0_i32_0 = arith.constant 0 : i32
    %c0_i32_1 = arith.constant 0 : i32
    return %c0_i32, %c0_i32_0 : i32, i32
  }
  func.func @transform_7(%arg0: i32) -> (i32, i32) {
    %c0_i32 = arith.constant 0 : i32
    %c0_i32_0 = arith.constant 0 : i32
    %c0_i32_1 = arith.constant 0 : i32
    return %c0_i32, %c0_i32_0 : i32, i32
  }
  func.func @transform_8(%arg0: i32) -> (i32, i32) {
    %c0_i32 = arith.constant 0 : i32
    %c0_i32_0 = arith.constant 0 : i32
    return %arg0, %c0_i32 : i32, i32
  }
}

module attributes {stable_mosaic.version = 11 : i64} {
  func.func @_mm_bn_act_kernel(%arg0: i32, %arg1: memref<128x72xbf16, #tpu.memory_space<vmem>>, %arg2: memref<72x8xbf16, #tpu.memory_space<vmem>>, %arg3: memref<1x8xf32, #tpu.memory_space<vmem>>, %arg4: memref<1x8xf32, #tpu.memory_space<vmem>>, %arg5: memref<128x8xbf16, #tpu.memory_space<vmem>>) attributes {dimension_semantics = [#tpu.dimension_semantics<parallel>], iteration_bounds = array<i64: 1>, scalar_prefetch = 0 : i64, scratch_operands = 0 : i64, tpu.core_type = #tpu.core_type<tc>, window_params = [{transform_indices = @transform_0, window_bounds = array<i64: 128, 72>}, {pipeline_mode = #tpu.pipeline_mode<synchronous>, transform_indices = @transform_1, window_bounds = array<i64: 72, 8>}, {pipeline_mode = #tpu.pipeline_mode<synchronous>, transform_indices = @transform_2, window_bounds = array<i64: 1, 8>}, {pipeline_mode = #tpu.pipeline_mode<synchronous>, transform_indices = @transform_3, window_bounds = array<i64: 1, 8>}, {transform_indices = @transform_4, window_bounds = array<i64: 128, 8>}]} {
    %c0 = arith.constant 0 : index
    %c0_0 = arith.constant 0 : index
    %0 = vector.load %arg1[%c0, %c0_0] : memref<128x72xbf16, #tpu.memory_space<vmem>>, vector<128x72xbf16>
    %c0_1 = arith.constant 0 : index
    %c0_2 = arith.constant 0 : index
    %1 = vector.load %arg2[%c0_1, %c0_2] : memref<72x8xbf16, #tpu.memory_space<vmem>>, vector<72x8xbf16>
    %cst = arith.constant dense<0.000000e+00> : vector<128x8xf32>
    %2 = tpu.matmul %0, %1, %cst {dimension_numbers = #tpu.dot_dimension_numbers<[1], [0], [0], [1], [0, 0, 1, 1], [], []>} : vector<128x72xbf16>, vector<72x8xbf16>, vector<128x8xf32> -> vector<128x8xf32>
    %c0_3 = arith.constant 0 : index
    %c0_4 = arith.constant 0 : index
    %3 = vector.load %arg3[%c0_3, %c0_4] : memref<1x8xf32, #tpu.memory_space<vmem>>, vector<1x8xf32>
    %4 = vector.broadcast %3 : vector<1x8xf32> to vector<128x8xf32>
    %5 = arith.mulf %2, %4 : vector<128x8xf32>
    %c0_5 = arith.constant 0 : index
    %c0_6 = arith.constant 0 : index
    %6 = vector.load %arg4[%c0_5, %c0_6] : memref<1x8xf32, #tpu.memory_space<vmem>>, vector<1x8xf32>
    %7 = vector.broadcast %6 : vector<1x8xf32> to vector<128x8xf32>
    %8 = arith.addf %5, %7 : vector<128x8xf32>
    %cst_7 = arith.constant 0.000000e+00 : f32
    %9 = vector.broadcast %cst_7 : f32 to vector<128x8xf32>
    %10 = arith.maximumf %8, %9 : vector<128x8xf32>
    %11 = arith.truncf %10 : vector<128x8xf32> to vector<128x8xbf16>
    %c0_8 = arith.constant 0 : index
    %c0_9 = arith.constant 0 : index
    %12 = vector.load %arg5[%c0_8, %c0_9] : memref<128x8xbf16, #tpu.memory_space<vmem>>, vector<128x8xbf16>
    tpu.vector_store %arg5[%c0_8, %c0_9], %11 {strides = array<i32>} : memref<128x8xbf16, #tpu.memory_space<vmem>>, vector<128x8xbf16>,
    return
  }
  func.func @transform_0(%arg0: i32) -> (i32, i32) {
    %c0_i32 = arith.constant 0 : i32
    %c0_i32_0 = arith.constant 0 : i32
    return %arg0, %c0_i32 : i32, i32
  }
  func.func @transform_1(%arg0: i32) -> (i32, i32) {
    %c0_i32 = arith.constant 0 : i32
    %c0_i32_0 = arith.constant 0 : i32
    %c0_i32_1 = arith.constant 0 : i32
    return %c0_i32, %c0_i32_0 : i32, i32
  }
  func.func @transform_2(%arg0: i32) -> (i32, i32) {
    %c0_i32 = arith.constant 0 : i32
    %c0_i32_0 = arith.constant 0 : i32
    %c0_i32_1 = arith.constant 0 : i32
    return %c0_i32, %c0_i32_0 : i32, i32
  }
  func.func @transform_3(%arg0: i32) -> (i32, i32) {
    %c0_i32 = arith.constant 0 : i32
    %c0_i32_0 = arith.constant 0 : i32
    %c0_i32_1 = arith.constant 0 : i32
    return %c0_i32, %c0_i32_0 : i32, i32
  }
  func.func @transform_4(%arg0: i32) -> (i32, i32) {
    %c0_i32 = arith.constant 0 : i32
    %c0_i32_0 = arith.constant 0 : i32
    return %arg0, %c0_i32 : i32, i32
  }
}

</mosaic_0001>

<bundles_post_ra>
// kernel: bottleneck_forward.3
= control target key start
LH: loop header
LB: loop body
LE: loop exit
PB: predicated region body
PF: predicated region fallthrough
CT: control target
= control target key end

     0   :  { %9 = vsyncpa [#allocation3], 0  ;;  %s2024_s0 = inlined_call_operand.hbm [shape: bf16[512,16], index: 0, kind: input, shape index: {}]   ;;  %s2025_s1 = inlined_call_operand.hbm [shape: bf16[16,8], index: 1, kind: input, shape index: {}]   ;;  %s2026_s2 = inlined_call_operand.hbm [shape: f32[1,8], index: 2, kind: input, shape index: {}]   ;;  %s2027_s3 = inlined_call_operand.hbm [shape: f32[1,8], index: 3, kind: input, shape index: {}]   ;;  %s2028_s4 = inlined_call_operand.hbm [shape: bf16[512,8], index: 4, kind: output, shape index: {}]  }
   0x1   :  { %10 = vsyncpa [#allocation6], 0 }
   0x2   :  { %11 = vsyncpa [#allocation9], 0 }
   0x3   :  { %12 = vsyncpa [#allocation4], 0  ;;  %s1688_s15 = smov [#allocation5]   ;;  %s1689_s17 = smov [#allocation2]  }
   0x4   :  { %s30_s16 = sshll.u32 %s1688_s15, 4  ;;  %s18_s18 = sshll.u32 %s1689_s17, 4  ;;  %s31_s16 = int_to_ptr.vmem [resolvable:$true] %s30_s16  ;;  %s1720_s18 = int_to_ptr.vmem [resolvable:$true] %s18_s18 }
   0x5   :  { %s1570_s21 = scalar_lea.hbm %s2025_s1, 128 }
   0x6   :  { %p1571_p0 = scmp.ne.s32.totalorder %s2025_s1, %s1570_s21  ;;  %p1574_p1 = scmp.lt.u32.totalorder %s1570_s21, %s2025_s1 }
   0x8   :  { %p1576_p2 = pnand %p1574_p1, %p1571_p0 }
   0xa   :  { %1579 = shalt.err (!%p1576_p2)
}
   0xb   :  { %s1580_s26 = scalar_lea.vmem %s31_s16, 128  ;;  %p1585_p4 = scmp.lt.s32.totalorder %s31_s16, %s31_s16 }
   0xc   :  { %p1581_p3 = scmp.ne.s32.totalorder %s31_s16, %s1580_s26  ;;  %p1586_p5 = scmp.lt.s32.totalorder %s1580_s26, %s1580_s26 }
   0xe   :  { %p1587_p6 = por %p1586_p5, %p1585_p4 }
  0x10   :  { %p1588_p7 = pnand %p1587_p6, %p1581_p3 }
  0x12   :  { %1591 = shalt.err (!%p1588_p7)
}
  0x13   :  { %s1690_s27 = smov 64   ;;  %s1691_s28 = smov 4  }
  0x14   :  { %36 = dma.hbm_to_vmem [thread:$0]  %s2025_s1, 128, %s31_s16, [#allocation6], %s1690_s27, %s1690_s27, %s1691_s28  }
  0x15   :  { %s1592_s7 = scalar_lea.hbm %s2024_s0, 4096 }
  0x16   :  { %p1593_p8 = scmp.ne.s32.totalorder %s2024_s0, %s1592_s7  ;;  %p1596_p9 = scmp.lt.u32.totalorder %s1592_s7, %s2024_s0 }
  0x18   :  { %p1598_p10 = pnand %p1596_p9, %p1593_p8 }
  0x1a   :  { %1601 = shalt.err (!%p1598_p10)
}
  0x1b   :  { %s1602_s12 = scalar_lea.vmem %s1720_s18, 4096  ;;  %p1607_p12 = scmp.lt.s32.totalorder %s1720_s18, %s1720_s18 }
  0x1c   :  { %p1603_p11 = scmp.ne.s32.totalorder %s1720_s18, %s1602_s12  ;;  %p1608_p13 = scmp.lt.s32.totalorder %s1602_s12, %s1602_s12 }
  0x1e   :  { %p1609_p0 = por %p1608_p13, %p1607_p12 }
  0x20   :  { %p1610_p1 = pnand %p1609_p0, %p1603_p11 }
  0x22   :  { %1613 = shalt.err (!%p1610_p1)
}
  0x23   :  { %24 = dma.hbm_to_vmem [thread:$0]  %s2024_s0, 4096, %s1720_s18, [#allocation3], %s1690_s27, %s1690_s27, %s1691_s28  }
  0x24   :  { %s1692_s14 = smov [#allocation7]   ;;  %s1693_s16 = smov [#allocation8]  }
  0x25   :  { %s43_s15 = sshll.u32 %s1692_s14, 4  ;;  %s53_s17 = sshll.u32 %s1693_s16, 4  ;;  %s44_s15 = int_to_ptr.vmem [resolvable:$true] %s43_s15  ;;  %s54_s17 = int_to_ptr.vmem [resolvable:$true] %s53_s17 }
  0x26   :  { %s1614_s21 = scalar_lea.hbm %s2026_s2, 16 }
  0x27   :  { %p1615_p2 = scmp.ne.s32.totalorder %s2026_s2, %s1614_s21  ;;  %p1618_p3 = scmp.lt.u32.totalorder %s1614_s21, %s2026_s2 }
  0x29   :  { %p1620_p4 = pnand %p1618_p3, %p1615_p2 }
  0x2b   :  { %1623 = shalt.err (!%p1620_p4)
}
  0x2c   :  { %s1624_s0 = scalar_lea.vmem %s44_s15, 16  ;;  %s1628_s18 = scalar_lea.vmem %s44_s15, 32 }
  0x2d   :  { %p1625_p5 = scmp.ne.s32.totalorder %s44_s15, %s1624_s0  ;;  %p1629_p6 = scmp.lt.s32.totalorder %s44_s15, %s44_s15 }
  0x2e   :  { %p1630_p7 = scmp.lt.s32.totalorder %s1628_s18, %s1624_s0 }
  0x30   :  { %p1631_p8 = por %p1630_p7, %p1629_p6 }
  0x32   :  { %p1632_p9 = pnand %p1631_p8, %p1625_p5 }
  0x34   :  { %1635 = shalt.err (!%p1632_p9)
}
  0x35   :  { %46 = dma.hbm_to_vmem [thread:$0]  %s2026_s2, 16, %s44_s15, [#allocation6]  }
  0x36   :  { %s1636_s6 = scalar_lea.hbm %s2027_s3, 16 }
  0x37   :  { %p1637_p10 = scmp.ne.s32.totalorder %s2027_s3, %s1636_s6  ;;  %p1640_p11 = scmp.lt.u32.totalorder %s1636_s6, %s2027_s3 }
  0x39   :  { %p1642_p12 = pnand %p1640_p11, %p1637_p10 }
  0x3b   :  { %1645 = shalt.err (!%p1642_p12)
}
  0x3c   :  { %s1646_s11 = scalar_lea.vmem %s54_s17, 16  ;;  %s1650_s12 = scalar_lea.vmem %s54_s17, 32 }
  0x3d   :  { %p1647_p13 = scmp.ne.s32.totalorder %s54_s17, %s1646_s11  ;;  %p1651_p0 = scmp.lt.s32.totalorder %s54_s17, %s54_s17 }
  0x3e   :  { %p1652_p1 = scmp.lt.s32.totalorder %s1650_s12, %s1646_s11 }
  0x40   :  { %p1653_p2 = por %p1652_p1, %p1651_p0 }
  0x42   :  { %p1654_p3 = pnand %p1653_p2, %p1647_p13 }
  0x44   :  { %1657 = shalt.err (!%p1654_p3)
}
  0x45   :  { %56 = dma.hbm_to_vmem [thread:$0]  %s2027_s3, 16, %s54_s17, [#allocation9]  }
  0x46   :  { %1680 = dma.done.wait [#allocation3], 4096  }
  0x47   :  { %1681 = vsyncadd [#allocation3], 4294963200 }
  0x48   :  { %1682 = dma.done.wait [#allocation6], 144  }
  0x49   :  { %1683 = vsyncadd [#allocation6], 4294967152 }
  0x4a   :  { %1684 = dma.done.wait [#allocation9], 16  }
  0x4b   :  { %1685 = vsyncadd [#allocation9], 4294967280  ;;  %v1537_v0 = vld [vmem:[#allocation5] sm:$0xff]   ;;  %vm302_vm0 = vcmask 130048   ;;  %v1540_v3 = vld [vmem:[#allocation2 + $0x8] sm:$0xff]   ;;  %vm1150_vm1 = vcmask 60416  }
  0x4c   :  { %v1538_v1 = vld [vmem:[#allocation2] sm:$0xff]   ;;  %1462 = vmatprep.subr.bf16.mxu0 %v1537_v0  ;;  %1528 = vmatprep.subr.bf16.mxu1 %v1537_v0  ;;  %v1541_v4 = vld [vmem:[#allocation2 + $0x88] sm:$0xff]   ;;  %v1542_v5 = vld [vmem:[#allocation2 + $0x10] sm:$0xff]   ;;  %s1694_s3 = smov [#allocation10]  }
  0x4d   :  { %v1539_v2 = vld [vmem:[#allocation2 + $0x80] sm:$0xff]   ;;  %1463 = vmatpush3.bf16.msra.mxu0 %v1537_v0  ;;  %1529 = vmatpush3.bf16.msra.mxu1 %v1537_v0  ;;  %v1543_v6 = vld [vmem:[#allocation2 + $0x90] sm:$0xff]   ;;  %v1544_v7 = vld [vmem:[#allocation2 + $0x18] sm:$0xff]   ;;  %s1220_s13 = sshll.u32 %s1694_s3, 4  ;;  %s1221_s13 = int_to_ptr.vmem [resolvable:$true] %s1220_s13 }
  0x4e   :  { %1464 = vmatprep.mubr.msk.bf16.mxu0 %vm302_vm0, %v1538_v1  ;;  %1496 = vmatprep.mubr.msk.bf16.mxu1 %vm302_vm0, %v1539_v2  ;;  %v1545_v8 = vld [vmem:[#allocation2 + $0x98] sm:$0xff]   ;;  %v1546_v9 = vld [vmem:[#allocation2 + $0x20] sm:$0xff]   ;;  %v1548_v11 = vld [vmem:[#allocation2 + $0x28] sm:$0xff]   ;;  %s1658_s14 = scalar_lea.vmem %s1221_s13, 4096  ;;  %p1663_p5 = scmp.lt.s32.totalorder %s1221_s13, %s1221_s13 }
  0x4f   :  { %v1547_v10 = vld [vmem:[#allocation2 + $0xa0] sm:$0xff]   ;;  %v1549_v12 = vld [vmem:[#allocation2 + $0xa8] sm:$0xff]   ;;  %v1550_v13 = vld [vmem:[#allocation2 + $0x30] sm:$0xff]   ;;  %p1659_p4 = scmp.ne.s32.totalorder %s1221_s13, %s1658_s14  ;;  %p1664_p6 = scmp.lt.s32.totalorder %s1658_s14, %s1658_s14 }
  0x50   :  { %1465 = vmatmul.mubr.msk.bf16.vlgmr.msra.gmra.mrb[0].mxu0 %vm302_vm0, %v1540_v3  ;;  %1497 = vmatmul.mubr.msk.bf16.vlgmr.msra.gmra.mrb[0].mxu1 %vm302_vm0, %v1541_v4  ;;  %v1551_v14 = vld [vmem:[#allocation2 + $0xb0] sm:$0xff]   ;;  %v1552_v15 = vld [vmem:[#allocation2 + $0x38] sm:$0xff]   ;;  %v1554_v17 = vld [vmem:[#allocation2 + $0x40] sm:$0xff]  }
  0x51   :  { %1468 = vmatprep.mubr.msk.bf16.mxu0 %vm302_vm0, %v1542_v5  ;;  %1500 = vmatprep.mubr.msk.bf16.mxu1 %vm302_vm0, %v1543_v6  ;;  %v1553_v16 = vld [vmem:[#allocation2 + $0xb8] sm:$0xff]   ;;  %v1555_v18 = vld [vmem:[#allocation2 + $0xc0] sm:$0xff]   ;;  %v1556_v19 = vld [vmem:[#allocation2 + $0x48] sm:$0xff]   ;;  %p1665_p7 = por %p1664_p6, %p1663_p5 }
  0x52   :  { %v1557_v20 = vld [vmem:[#allocation2 + $0xc8] sm:$0xff]   ;;  %v1558_v21 = vld [vmem:[#allocation2 + $0x50] sm:$0xff]   ;;  %v1560_v23 = vld [vmem:[#allocation2 + $0x58] sm:$0xff]  }
  0x53   :  { %v1559_v22 = vld [vmem:[#allocation2 + $0xd0] sm:$0xff]   ;;  %v1561_v24 = vld [vmem:[#allocation2 + $0xd8] sm:$0xff]   ;;  %v1562_v25 = vld [vmem:[#allocation2 + $0x60] sm:$0xff]   ;;  %p1666_p8 = pnand %p1665_p7, %p1659_p4 }
  0x54   :  { %v1563_v26 = vld [vmem:[#allocation2 + $0xe0] sm:$0xff]   ;;  %v1564_v27 = vld [vmem:[#allocation2 + $0x68] sm:$0xff]   ;;  %v1566_v29 = vld [vmem:[#allocation2 + $0x70] sm:$0xff]  }
  0x55   :  { %v1565_v28 = vld [vmem:[#allocation2 + $0xe8] sm:$0xff]   ;;  %v1567_v30 = vld [vmem:[#allocation2 + $0xf0] sm:$0xff]   ;;  %v1568_v31 = vld [vmem:[#allocation2 + $0x78] sm:$0xff]  }
  0x56   :  { %v1569_v32 = vld [vmem:[#allocation2 + $0xf8] sm:$0xff]   ;;  %v1813_v33 = vld [vmem:[#allocation7] ss:$0 sm:$0xff]  ;;  %v1815_v35 = vld [vmem:[#allocation8] ss:$0 sm:$0xff] }
  0x58   :  { %1469 = vmatmul.mubr.msk.bf16.gmra.mrb[4].mxu0 %vm302_vm0, %v1544_v7  ;;  %1501 = vmatmul.mubr.msk.bf16.gmra.mrb[4].mxu1 %vm302_vm0, %v1545_v8 }
  0x59   :  { %1472 = vmatprep.mubr.msk.bf16.mxu0 %vm302_vm0, %v1546_v9  ;;  %1504 = vmatprep.mubr.msk.bf16.mxu1 %vm302_vm0, %v1547_v10 }
  0x60   :  { %1473 = vmatmul.mubr.msk.bf16.gmra.mrb[8].mxu0 %vm302_vm0, %v1548_v11  ;;  %1505 = vmatmul.mubr.msk.bf16.gmra.mrb[8].mxu1 %vm302_vm0, %v1549_v12 }
  0x61   :  { %1476 = vmatprep.mubr.msk.bf16.mxu0 %vm302_vm0, %v1550_v13  ;;  %1508 = vmatprep.mubr.msk.bf16.mxu1 %vm302_vm0, %v1551_v14 }
  0x68   :  { %1477 = vmatmul.mubr.msk.bf16.gmra.mrb[12].mxu0 %vm302_vm0, %v1552_v15  ;;  %1509 = vmatmul.mubr.msk.bf16.gmra.mrb[12].mxu1 %vm302_vm0, %v1553_v16 }
  0x69   :  { %1480 = vmatprep.mubr.msk.bf16.mxu0 %vm302_vm0, %v1554_v17  ;;  %1512 = vmatprep.mubr.msk.bf16.mxu1 %vm302_vm0, %v1555_v18 }
  0x70   :  { %1481 = vmatmul.mubr.msk.bf16.gmra.mrb[16].mxu0 %vm302_vm0, %v1556_v19  ;;  %1513 = vmatmul.mubr.msk.bf16.gmra.mrb[16].mxu1 %vm302_vm0, %v1557_v20 }
  0x71   :  { %1484 = vmatprep.mubr.msk.bf16.mxu0 %vm302_vm0, %v1558_v21  ;;  %1516 = vmatprep.mubr.msk.bf16.mxu1 %vm302_vm0, %v1559_v22 }
  0x78   :  { %1485 = vmatmul.mubr.msk.bf16.gmra.mrb[20].mxu0 %vm302_vm0, %v1560_v23  ;;  %1517 = vmatmul.mubr.msk.bf16.gmra.mrb[20].mxu1 %vm302_vm0, %v1561_v24 }
  0x79   :  { %1488 = vmatprep.mubr.msk.bf16.mxu0 %vm302_vm0, %v1562_v25  ;;  %1520 = vmatprep.mubr.msk.bf16.mxu1 %vm302_vm0, %v1563_v26 }
  0x80   :  { %1489 = vmatmul.mubr.msk.bf16.gmra.mrb[24].mxu0 %vm302_vm0, %v1564_v27  ;;  %1521 = vmatmul.mubr.msk.bf16.gmra.mrb[24].mxu1 %vm302_vm0, %v1565_v28 }
  0x81   :  { %1492 = vmatprep.mubr.msk.bf16.mxu0 %vm302_vm0, %v1566_v29  ;;  %1524 = vmatprep.mubr.msk.bf16.mxu1 %vm302_vm0, %v1567_v30 }
  0x88   :  { %1493 = vmatmul.mubr.msk.bf16.gmra.mrb[28].mxu0 %vm302_vm0, %v1568_v31  ;;  %1525 = vmatmul.mubr.msk.bf16.gmra.mrb[28].mxu1 %vm302_vm0, %v1569_v32 }
 0x123   :  { %v1466_v34 = vpop.f32.mrb[0].mxu0  ;;  %v1498_v36 = vpop.f32.mrb[0].mxu1 }
 0x124   :  { %v697_v37 = vmul.f32 %v1466_v34, %v1813_v33  ;;  %v729_v38 = vmul.f32 %v1498_v36, %v1813_v33  ;;  %v433_v39 = vpop.f32.mrb[1].mxu0  ;;  %v561_v40 = vpop.f32.mrb[1].mxu1 }
 0x125   :  { %v695_v41 = vmul.f32 %v1813_v33, %v433_v39  ;;  %v727_v42 = vmul.f32 %v1813_v33, %v561_v40  ;;  %v1467_v43 = vpop.f32.mrb[2].mxu0  ;;  %v1499_v44 = vpop.f32.mrb[2].mxu1 }
 0x126   :  { %v768_v45 = vadd.f32 %v1815_v35, %v697_v37  ;;  %v800_v46 = vadd.f32 %v1815_v35, %v729_v38  ;;  %v698_v47 = vmul.f32 %v1467_v43, %v1813_v33  ;;  %v730_v48 = vmul.f32 %v1499_v44, %v1813_v33  ;;  %v436_v49 = vpop.f32.mrb[3].mxu0  ;;  %v564_v50 = vpop.f32.mrb[3].mxu1 }
 0x127   :  { %v766_v51 = vadd.f32 %v1815_v35, %v695_v41  ;;  %v798_v52 = vadd.f32 %v1815_v35, %v727_v42  ;;  %v696_v53 = vmul.f32 %v1813_v33, %v436_v49  ;;  %v728_v54 = vmul.f32 %v1813_v33, %v564_v50 }
 0x128   :  { %v832_v55 = vmax.f32 %v768_v45, 0.0  ;;  %v864_v56 = vmax.f32 %v800_v46, 0.0  ;;  %v769_v57 = vadd.f32 %v1815_v35, %v698_v47  ;;  %v801_v58 = vadd.f32 %v1815_v35, %v730_v48 }
 0x129   :  { %v830_v59 = vmax.f32 %v766_v51, 0.0  ;;  %v862_v60 = vmax.f32 %v798_v52, 0.0  ;;  %v767_v61 = vadd.f32 %v1815_v35, %v696_v53  ;;  %v799_v62 = vadd.f32 %v1815_v35, %v728_v54 }
 0x12a   :  { %v1367_v63 = vpack.c.bf16 %v832_v55, %v832_v55  ;;  %v1399_v0 = vpack.c.bf16 %v864_v56, %v864_v56  ;;  %v833_v1 = vmax.f32 %v769_v57, 0.0  ;;  %v865_v2 = vmax.f32 %v801_v58, 0.0 }
 0x12b   :  { %v1365_v3 = vpack.c.bf16 %v830_v59, %v830_v59  ;;  %v1397_v4 = vpack.c.bf16 %v862_v60, %v862_v60  ;;  %v831_v5 = vmax.f32 %v767_v61, 0.0  ;;  %v863_v6 = vmax.f32 %v799_v62, 0.0  ;;  %v1470_v7 = vpop.f32.mrb[4].mxu0  ;;  %v1502_v8 = vpop.f32.mrb[4].mxu1 }
 0x12c   :  { %1153 = vst.msk [vmem:[#allocation10 + $0x8] sm:$0xf] %vm1150_vm1, %v1367_v63  ;;  %1185 = vst.msk [vmem:[#allocation10 + $0x88] sm:$0xf] %vm1150_vm1, %v1399_v0  ;;  %v1368_v9 = vpack.c.bf16 %v833_v1, %v833_v1  ;;  %v1400_v10 = vpack.c.bf16 %v865_v2, %v865_v2  ;;  %v701_v11 = vmul.f32 %v1470_v7, %v1813_v33  ;;  %v449_v13 = vpop.f32.mrb[5].mxu0  ;;  %v577_v14 = vpop.f32.mrb[5].mxu1 }
 0x12d   :  { %v733_v12 = vmul.f32 %v1502_v8, %v1813_v33  ;;  %1151 = vst.msk [vmem:[#allocation10] sm:$0xf] %vm1150_vm1, %v1365_v3  ;;  %1183 = vst.msk [vmem:[#allocation10 + $0x80] sm:$0xf] %vm1150_vm1, %v1397_v4  ;;  %v1366_v15 = vpack.c.bf16 %v831_v5, %v831_v5  ;;  %v1398_v16 = vpack.c.bf16 %v863_v6, %v863_v6  ;;  %v1471_v19 = vpop.f32.mrb[6].mxu0  ;;  %v1503_v20 = vpop.f32.mrb[6].mxu1 }
 0x12e   :  { %v699_v17 = vmul.f32 %v1813_v33, %v449_v13  ;;  %v731_v18 = vmul.f32 %v1813_v33, %v577_v14  ;;  %1154 = vst.msk [vmem:[#allocation10 + $0xc] sm:$0xf] %vm1150_vm1, %v1368_v9  ;;  %1186 = vst.msk [vmem:[#allocation10 + $0x8c] sm:$0xf] %vm1150_vm1, %v1400_v10  ;;  %v772_v21 = vadd.f32 %v1815_v35, %v701_v11  ;;  %v452_v25 = vpop.f32.mrb[7].mxu0  ;;  %v580_v26 = vpop.f32.mrb[7].mxu1 }
 0x12f   :  { %v804_v22 = vadd.f32 %v1815_v35, %v733_v12  ;;  %v702_v23 = vmul.f32 %v1471_v19, %v1813_v33  ;;  %v734_v24 = vmul.f32 %v1503_v20, %v1813_v33  ;;  %1152 = vst.msk [vmem:[#allocation10 + $0x4] sm:$0xf] %vm1150_vm1, %v1366_v15  ;;  %1184 = vst.msk [vmem:[#allocation10 + $0x84] sm:$0xf] %vm1150_vm1, %v1398_v16 }
 0x130   :  { %v770_v27 = vadd.f32 %v1815_v35, %v699_v17  ;;  %v802_v28 = vadd.f32 %v1815_v35, %v731_v18  ;;  %v700_v29 = vmul.f32 %v1813_v33, %v452_v25  ;;  %v732_v30 = vmul.f32 %v1813_v33, %v580_v26 }
 0x131   :  { %v836_v31 = vmax.f32 %v772_v21, 0.0  ;;  %v868_v32 = vmax.f32 %v804_v22, 0.0  ;;  %v773_v34 = vadd.f32 %v1815_v35, %v702_v23  ;;  %v805_v36 = vadd.f32 %v1815_v35, %v734_v24 }
 0x132   :  { %v834_v37 = vmax.f32 %v770_v27, 0.0  ;;  %v866_v38 = vmax.f32 %v802_v28, 0.0  ;;  %v771_v39 = vadd.f32 %v1815_v35, %v700_v29  ;;  %v803_v40 = vadd.f32 %v1815_v35, %v732_v30 }
 0x133   :  { %v1371_v41 = vpack.c.bf16 %v836_v31, %v836_v31  ;;  %v1403_v42 = vpack.c.bf16 %v868_v32, %v868_v32  ;;  %v837_v43 = vmax.f32 %v773_v34, 0.0  ;;  %v869_v44 = vmax.f32 %v805_v36, 0.0  ;;  %v1474_v49 = vpop.f32.mrb[8].mxu0  ;;  %v1506_v50 = vpop.f32.mrb[8].mxu1 }
 0x134   :  { %v1369_v45 = vpack.c.bf16 %v834_v37, %v834_v37  ;;  %v1401_v46 = vpack.c.bf16 %v866_v38, %v866_v38  ;;  %v835_v47 = vmax.f32 %v771_v39, 0.0  ;;  %v867_v48 = vmax.f32 %v803_v40, 0.0  ;;  %v465_v55 = vpop.f32.mrb[9].mxu0  ;;  %v593_v56 = vpop.f32.mrb[9].mxu1 }
 0x135   :  { %1157 = vst.msk [vmem:[#allocation10 + $0x18] sm:$0xf] %vm1150_vm1, %v1371_v41  ;;  %1189 = vst.msk [vmem:[#allocation10 + $0x98] sm:$0xf] %vm1150_vm1, %v1403_v42  ;;  %v1372_v51 = vpack.c.bf16 %v837_v43, %v837_v43  ;;  %v1404_v52 = vpack.c.bf16 %v869_v44, %v869_v44  ;;  %v705_v53 = vmul.f32 %v1474_v49, %v1813_v33  ;;  %v1475_v61 = vpop.f32.mrb[10].mxu0  ;;  %v1507_v62 = vpop.f32.mrb[10].mxu1 }
 0x136   :  { %v737_v54 = vmul.f32 %v1506_v50, %v1813_v33  ;;  %1155 = vst.msk [vmem:[#allocation10 + $0x10] sm:$0xf] %vm1150_vm1, %v1369_v45  ;;  %1187 = vst.msk [vmem:[#allocation10 + $0x90] sm:$0xf] %vm1150_vm1, %v1401_v46  ;;  %v1370_v57 = vpack.c.bf16 %v835_v47, %v835_v47  ;;  %v1402_v58 = vpack.c.bf16 %v867_v48, %v867_v48  ;;  %v468_v3 = vpop.f32.mrb[11].mxu0  ;;  %v596_v4 = vpop.f32.mrb[11].mxu1 }
 0x137   :  { %v703_v59 = vmul.f32 %v1813_v33, %v465_v55  ;;  %v735_v60 = vmul.f32 %v1813_v33, %v593_v56  ;;  %1158 = vst.msk [vmem:[#allocation10 + $0x1c] sm:$0xf] %vm1150_vm1, %v1372_v51  ;;  %1190 = vst.msk [vmem:[#allocation10 + $0x9c] sm:$0xf] %vm1150_vm1, %v1404_v52  ;;  %v776_v63 = vadd.f32 %v1815_v35, %v705_v53 }
 0x138   :  { %v808_v0 = vadd.f32 %v1815_v35, %v737_v54  ;;  %v706_v1 = vmul.f32 %v1475_v61, %v1813_v33  ;;  %v738_v2 = vmul.f32 %v1507_v62, %v1813_v33  ;;  %1156 = vst.msk [vmem:[#allocation10 + $0x14] sm:$0xf] %vm1150_vm1, %v1370_v57  ;;  %1188 = vst.msk [vmem:[#allocation10 + $0x94] sm:$0xf] %vm1150_vm1, %v1402_v58 }
 0x139   :  { %v774_v5 = vadd.f32 %v1815_v35, %v703_v59  ;;  %v806_v6 = vadd.f32 %v1815_v35, %v735_v60  ;;  %v704_v7 = vmul.f32 %v1813_v33, %v468_v3  ;;  %v736_v8 = vmul.f32 %v1813_v33, %v596_v4 }
 0x13a   :  { %v840_v9 = vmax.f32 %v776_v63, 0.0  ;;  %v872_v10 = vmax.f32 %v808_v0, 0.0  ;;  %v777_v11 = vadd.f32 %v1815_v35, %v706_v1  ;;  %v809_v12 = vadd.f32 %v1815_v35, %v738_v2 }
 0x13b   :  { %v838_v13 = vmax.f32 %v774_v5, 0.0  ;;  %v870_v14 = vmax.f32 %v806_v6, 0.0  ;;  %v775_v15 = vadd.f32 %v1815_v35, %v704_v7  ;;  %v807_v16 = vadd.f32 %v1815_v35, %v736_v8  ;;  %v1478_v25 = vpop.f32.mrb[12].mxu0  ;;  %v1510_v26 = vpop.f32.mrb[12].mxu1 }
 0x13c   :  { %v1375_v17 = vpack.c.bf16 %v840_v9, %v840_v9  ;;  %v1407_v18 = vpack.c.bf16 %v872_v10, %v872_v10  ;;  %v841_v19 = vmax.f32 %v777_v11, 0.0  ;;  %v873_v20 = vmax.f32 %v809_v12, 0.0  ;;  %v481_v31 = vpop.f32.mrb[13].mxu0  ;;  %v609_v32 = vpop.f32.mrb[13].mxu1 }
 0x13d   :  { %v1373_v21 = vpack.c.bf16 %v838_v13, %v838_v13  ;;  %v1405_v22 = vpack.c.bf16 %v870_v14, %v870_v14  ;;  %v839_v23 = vmax.f32 %v775_v15, 0.0  ;;  %v871_v24 = vmax.f32 %v807_v16, 0.0  ;;  %v1479_v39 = vpop.f32.mrb[14].mxu0  ;;  %v1511_v40 = vpop.f32.mrb[14].mxu1 }
 0x13e   :  { %1161 = vst.msk [vmem:[#allocation10 + $0x28] sm:$0xf] %vm1150_vm1, %v1375_v17  ;;  %1193 = vst.msk [vmem:[#allocation10 + $0xa8] sm:$0xf] %vm1150_vm1, %v1407_v18  ;;  %v1376_v27 = vpack.c.bf16 %v841_v19, %v841_v19  ;;  %v1408_v28 = vpack.c.bf16 %v873_v20, %v873_v20  ;;  %v709_v29 = vmul.f32 %v1478_v25, %v1813_v33  ;;  %v484_v45 = vpop.f32.mrb[15].mxu0  ;;  %v612_v46 = vpop.f32.mrb[15].mxu1 }
 0x13f   :  { %v741_v30 = vmul.f32 %v1510_v26, %v1813_v33  ;;  %1159 = vst.msk [vmem:[#allocation10 + $0x20] sm:$0xf] %vm1150_vm1, %v1373_v21  ;;  %1191 = vst.msk [vmem:[#allocation10 + $0xa0] sm:$0xf] %vm1150_vm1, %v1405_v22  ;;  %v1374_v34 = vpack.c.bf16 %v839_v23, %v839_v23  ;;  %v1406_v36 = vpack.c.bf16 %v871_v24, %v871_v24 }
 0x140   :  { %v707_v37 = vmul.f32 %v1813_v33, %v481_v31  ;;  %v739_v38 = vmul.f32 %v1813_v33, %v609_v32  ;;  %1162 = vst.msk [vmem:[#allocation10 + $0x2c] sm:$0xf] %vm1150_vm1, %v1376_v27  ;;  %1194 = vst.msk [vmem:[#allocation10 + $0xac] sm:$0xf] %vm1150_vm1, %v1408_v28  ;;  %v780_v41 = vadd.f32 %v1815_v35, %v709_v29 }
 0x141   :  { %v812_v42 = vadd.f32 %v1815_v35, %v741_v30  ;;  %v710_v43 = vmul.f32 %v1479_v39, %v1813_v33  ;;  %v742_v44 = vmul.f32 %v1511_v40, %v1813_v33  ;;  %1160 = vst.msk [vmem:[#allocation10 + $0x24] sm:$0xf] %vm1150_vm1, %v1374_v34  ;;  %1192 = vst.msk [vmem:[#allocation10 + $0xa4] sm:$0xf] %vm1150_vm1, %v1406_v36 }
 0x142   :  { %v778_v47 = vadd.f32 %v1815_v35, %v707_v37  ;;  %v810_v48 = vadd.f32 %v1815_v35, %v739_v38  ;;  %v708_v49 = vmul.f32 %v1813_v33, %v484_v45  ;;  %v740_v50 = vmul.f32 %v1813_v33, %v612_v46 }
 0x143   :  { %v844_v51 = vmax.f32 %v780_v41, 0.0  ;;  %v876_v52 = vmax.f32 %v812_v42, 0.0  ;;  %v781_v53 = vadd.f32 %v1815_v35, %v710_v43  ;;  %v813_v54 = vadd.f32 %v1815_v35, %v742_v44  ;;  %v1482_v3 = vpop.f32.mrb[16].mxu0  ;;  %v1514_v4 = vpop.f32.mrb[16].mxu1 }
 0x144   :  { %v842_v55 = vmax.f32 %v778_v47, 0.0  ;;  %v874_v56 = vmax.f32 %v810_v48, 0.0  ;;  %v779_v57 = vadd.f32 %v1815_v35, %v708_v49  ;;  %v811_v58 = vadd.f32 %v1815_v35, %v740_v50  ;;  %v497_v9 = vpop.f32.mrb[17].mxu0  ;;  %v625_v10 = vpop.f32.mrb[17].mxu1 }
 0x145   :  { %v1379_v59 = vpack.c.bf16 %v844_v51, %v844_v51  ;;  %v1411_v60 = vpack.c.bf16 %v876_v52, %v876_v52  ;;  %v845_v61 = vmax.f32 %v781_v53, 0.0  ;;  %v877_v62 = vmax.f32 %v813_v54, 0.0  ;;  %v1483_v15 = vpop.f32.mrb[18].mxu0  ;;  %v1515_v16 = vpop.f32.mrb[18].mxu1 }
 0x146   :  { %v1377_v63 = vpack.c.bf16 %v842_v55, %v842_v55  ;;  %v1409_v0 = vpack.c.bf16 %v874_v56, %v874_v56  ;;  %v843_v1 = vmax.f32 %v779_v57, 0.0  ;;  %v875_v2 = vmax.f32 %v811_v58, 0.0  ;;  %v500_v21 = vpop.f32.mrb[19].mxu0  ;;  %v628_v22 = vpop.f32.mrb[19].mxu1 }
 0x147   :  { %1165 = vst.msk [vmem:[#allocation10 + $0x38] sm:$0xf] %vm1150_vm1, %v1379_v59  ;;  %1197 = vst.msk [vmem:[#allocation10 + $0xb8] sm:$0xf] %vm1150_vm1, %v1411_v60  ;;  %v1380_v5 = vpack.c.bf16 %v845_v61, %v845_v61  ;;  %v1412_v6 = vpack.c.bf16 %v877_v62, %v877_v62  ;;  %v713_v7 = vmul.f32 %v1482_v3, %v1813_v33 }
 0x148   :  { %v745_v8 = vmul.f32 %v1514_v4, %v1813_v33  ;;  %1163 = vst.msk [vmem:[#allocation10 + $0x30] sm:$0xf] %vm1150_vm1, %v1377_v63  ;;  %1195 = vst.msk [vmem:[#allocation10 + $0xb0] sm:$0xf] %vm1150_vm1, %v1409_v0  ;;  %v1378_v11 = vpack.c.bf16 %v843_v1, %v843_v1  ;;  %v1410_v12 = vpack.c.bf16 %v875_v2, %v875_v2 }
 0x149   :  { %v711_v13 = vmul.f32 %v1813_v33, %v497_v9  ;;  %v743_v14 = vmul.f32 %v1813_v33, %v625_v10  ;;  %1166 = vst.msk [vmem:[#allocation10 + $0x3c] sm:$0xf] %vm1150_vm1, %v1380_v5  ;;  %1198 = vst.msk [vmem:[#allocation10 + $0xbc] sm:$0xf] %vm1150_vm1, %v1412_v6  ;;  %v784_v17 = vadd.f32 %v1815_v35, %v713_v7 }
 0x14a   :  { %v816_v18 = vadd.f32 %v1815_v35, %v745_v8  ;;  %v714_v19 = vmul.f32 %v1483_v15, %v1813_v33  ;;  %v746_v20 = vmul.f32 %v1515_v16, %v1813_v33  ;;  %1164 = vst.msk [vmem:[#allocation10 + $0x34] sm:$0xf] %vm1150_vm1, %v1378_v11  ;;  %1196 = vst.msk [vmem:[#allocation10 + $0xb4] sm:$0xf] %vm1150_vm1, %v1410_v12 }
 0x14b   :  { %v782_v23 = vadd.f32 %v1815_v35, %v711_v13  ;;  %v814_v24 = vadd.f32 %v1815_v35, %v743_v14  ;;  %v712_v25 = vmul.f32 %v1813_v33, %v500_v21  ;;  %v744_v26 = vmul.f32 %v1813_v33, %v628_v22  ;;  %v1486_v45 = vpop.f32.mrb[20].mxu0  ;;  %v1518_v46 = vpop.f32.mrb[20].mxu1 }
 0x14c   :  { %v848_v27 = vmax.f32 %v784_v17, 0.0  ;;  %v880_v28 = vmax.f32 %v816_v18, 0.0  ;;  %v785_v29 = vadd.f32 %v1815_v35, %v714_v19  ;;  %v817_v30 = vadd.f32 %v1815_v35, %v746_v20  ;;  %v513_v51 = vpop.f32.mrb[21].mxu0  ;;  %v641_v52 = vpop.f32.mrb[21].mxu1 }
 0x14d   :  { %v846_v31 = vmax.f32 %v782_v23, 0.0  ;;  %v878_v32 = vmax.f32 %v814_v24, 0.0  ;;  %v783_v34 = vadd.f32 %v1815_v35, %v712_v25  ;;  %v815_v36 = vadd.f32 %v1815_v35, %v744_v26  ;;  %v1487_v57 = vpop.f32.mrb[22].mxu0  ;;  %v1519_v58 = vpop.f32.mrb[22].mxu1 }
 0x14e   :  { %v1383_v37 = vpack.c.bf16 %v848_v27, %v848_v27  ;;  %v1415_v38 = vpack.c.bf16 %v880_v28, %v880_v28  ;;  %v849_v39 = vmax.f32 %v785_v29, 0.0  ;;  %v881_v40 = vmax.f32 %v817_v30, 0.0  ;;  %v516_v63 = vpop.f32.mrb[23].mxu0  ;;  %v644_v0 = vpop.f32.mrb[23].mxu1 }
 0x14f   :  { %v1381_v41 = vpack.c.bf16 %v846_v31, %v846_v31  ;;  %v1413_v42 = vpack.c.bf16 %v878_v32, %v878_v32  ;;  %v847_v43 = vmax.f32 %v783_v34, 0.0  ;;  %v879_v44 = vmax.f32 %v815_v36, 0.0 }
 0x150   :  { %1169 = vst.msk [vmem:[#allocation10 + $0x48] sm:$0xf] %vm1150_vm1, %v1383_v37  ;;  %1201 = vst.msk [vmem:[#allocation10 + $0xc8] sm:$0xf] %vm1150_vm1, %v1415_v38  ;;  %v1384_v47 = vpack.c.bf16 %v849_v39, %v849_v39  ;;  %v1416_v48 = vpack.c.bf16 %v881_v40, %v881_v40  ;;  %v717_v49 = vmul.f32 %v1486_v45, %v1813_v33 }
 0x151   :  { %v749_v50 = vmul.f32 %v1518_v46, %v1813_v33  ;;  %1167 = vst.msk [vmem:[#allocation10 + $0x40] sm:$0xf] %vm1150_vm1, %v1381_v41  ;;  %1199 = vst.msk [vmem:[#allocation10 + $0xc0] sm:$0xf] %vm1150_vm1, %v1413_v42  ;;  %v1382_v53 = vpack.c.bf16 %v847_v43, %v847_v43  ;;  %v1414_v54 = vpack.c.bf16 %v879_v44, %v879_v44 }
 0x152   :  { %v715_v55 = vmul.f32 %v1813_v33, %v513_v51  ;;  %v747_v56 = vmul.f32 %v1813_v33, %v641_v52  ;;  %1170 = vst.msk [vmem:[#allocation10 + $0x4c] sm:$0xf] %vm1150_vm1, %v1384_v47  ;;  %1202 = vst.msk [vmem:[#allocation10 + $0xcc] sm:$0xf] %vm1150_vm1, %v1416_v48  ;;  %v788_v59 = vadd.f32 %v1815_v35, %v717_v49 }
 0x153   :  { %v820_v60 = vadd.f32 %v1815_v35, %v749_v50  ;;  %v718_v61 = vmul.f32 %v1487_v57, %v1813_v33  ;;  %v750_v62 = vmul.f32 %v1519_v58, %v1813_v33  ;;  %1168 = vst.msk [vmem:[#allocation10 + $0x44] sm:$0xf] %vm1150_vm1, %v1382_v53  ;;  %1200 = vst.msk [vmem:[#allocation10 + $0xc4] sm:$0xf] %vm1150_vm1, %v1414_v54  ;;  %v1490_v21 = vpop.f32.mrb[24].mxu0  ;;  %v1522_v22 = vpop.f32.mrb[24].mxu1 }
 0x154   :  { %v786_v1 = vadd.f32 %v1815_v35, %v715_v55  ;;  %v818_v2 = vadd.f32 %v1815_v35, %v747_v56  ;;  %v716_v3 = vmul.f32 %v1813_v33, %v516_v63  ;;  %v748_v4 = vmul.f32 %v1813_v33, %v644_v0  ;;  %v529_v27 = vpop.f32.mrb[25].mxu0  ;;  %v657_v28 = vpop.f32.mrb[25].mxu1 }
 0x155   :  { %v852_v5 = vmax.f32 %v788_v59, 0.0  ;;  %v884_v6 = vmax.f32 %v820_v60, 0.0  ;;  %v789_v7 = vadd.f32 %v1815_v35, %v718_v61  ;;  %v821_v8 = vadd.f32 %v1815_v35, %v750_v62  ;;  %v1491_v34 = vpop.f32.mrb[26].mxu0  ;;  %v1523_v36 = vpop.f32.mrb[26].mxu1 }
 0x156   :  { %v850_v9 = vmax.f32 %v786_v1, 0.0  ;;  %v882_v10 = vmax.f32 %v818_v2, 0.0  ;;  %v787_v11 = vadd.f32 %v1815_v35, %v716_v3  ;;  %v819_v12 = vadd.f32 %v1815_v35, %v748_v4  ;;  %v532_v41 = vpop.f32.mrb[27].mxu0  ;;  %v660_v42 = vpop.f32.mrb[27].mxu1 }
 0x157   :  { %v1387_v13 = vpack.c.bf16 %v852_v5, %v852_v5  ;;  %v1419_v14 = vpack.c.bf16 %v884_v6, %v884_v6  ;;  %v853_v15 = vmax.f32 %v789_v7, 0.0  ;;  %v885_v16 = vmax.f32 %v821_v8, 0.0 }
 0x158   :  { %v1385_v17 = vpack.c.bf16 %v850_v9, %v850_v9  ;;  %v1417_v18 = vpack.c.bf16 %v882_v10, %v882_v10  ;;  %v851_v19 = vmax.f32 %v787_v11, 0.0  ;;  %v883_v20 = vmax.f32 %v819_v12, 0.0 }
 0x159   :  { %1173 = vst.msk [vmem:[#allocation10 + $0x58] sm:$0xf] %vm1150_vm1, %v1387_v13  ;;  %1205 = vst.msk [vmem:[#allocation10 + $0xd8] sm:$0xf] %vm1150_vm1, %v1419_v14  ;;  %v1388_v23 = vpack.c.bf16 %v853_v15, %v853_v15  ;;  %v1420_v24 = vpack.c.bf16 %v885_v16, %v885_v16  ;;  %v721_v25 = vmul.f32 %v1490_v21, %v1813_v33 }
 0x15a   :  { %v753_v26 = vmul.f32 %v1522_v22, %v1813_v33  ;;  %1171 = vst.msk [vmem:[#allocation10 + $0x50] sm:$0xf] %vm1150_vm1, %v1385_v17  ;;  %1203 = vst.msk [vmem:[#allocation10 + $0xd0] sm:$0xf] %vm1150_vm1, %v1417_v18  ;;  %v1386_v29 = vpack.c.bf16 %v851_v19, %v851_v19  ;;  %v1418_v30 = vpack.c.bf16 %v883_v20, %v883_v20 }
 0x15b   :  { %v719_v31 = vmul.f32 %v1813_v33, %v529_v27  ;;  %v751_v32 = vmul.f32 %v1813_v33, %v657_v28  ;;  %1174 = vst.msk [vmem:[#allocation10 + $0x5c] sm:$0xf] %vm1150_vm1, %v1388_v23  ;;  %1206 = vst.msk [vmem:[#allocation10 + $0xdc] sm:$0xf] %vm1150_vm1, %v1420_v24  ;;  %v792_v37 = vadd.f32 %v1815_v35, %v721_v25  ;;  %v1494_v63 = vpop.f32.mrb[28].mxu0  ;;  %v1526_v0 = vpop.f32.mrb[28].mxu1 }
 0x15c   :  { %v824_v38 = vadd.f32 %v1815_v35, %v753_v26  ;;  %v722_v39 = vmul.f32 %v1491_v34, %v1813_v33  ;;  %v754_v40 = vmul.f32 %v1523_v36, %v1813_v33  ;;  %1172 = vst.msk [vmem:[#allocation10 + $0x54] sm:$0xf] %vm1150_vm1, %v1386_v29  ;;  %1204 = vst.msk [vmem:[#allocation10 + $0xd4] sm:$0xf] %vm1150_vm1, %v1418_v30  ;;  %v545_v5 = vpop.f32.mrb[29].mxu0  ;;  %v673_v6 = vpop.f32.mrb[29].mxu1 }
 0x15d   :  { %v790_v43 = vadd.f32 %v1815_v35, %v719_v31  ;;  %v822_v44 = vadd.f32 %v1815_v35, %v751_v32  ;;  %v720_v45 = vmul.f32 %v1813_v33, %v532_v41  ;;  %v752_v46 = vmul.f32 %v1813_v33, %v660_v42  ;;  %v1495_v11 = vpop.f32.mrb[30].mxu0  ;;  %v1527_v12 = vpop.f32.mrb[30].mxu1 }
 0x15e   :  { %v856_v47 = vmax.f32 %v792_v37, 0.0  ;;  %v888_v48 = vmax.f32 %v824_v38, 0.0  ;;  %v793_v49 = vadd.f32 %v1815_v35, %v722_v39  ;;  %v825_v50 = vadd.f32 %v1815_v35, %v754_v40  ;;  %v548_v17 = vpop.f32.mrb[31].mxu0  ;;  %v676_v18 = vpop.f32.mrb[31].mxu1 }
 0x15f   :  { %v854_v51 = vmax.f32 %v790_v43, 0.0  ;;  %v886_v52 = vmax.f32 %v822_v44, 0.0  ;;  %v791_v53 = vadd.f32 %v1815_v35, %v720_v45  ;;  %v823_v54 = vadd.f32 %v1815_v35, %v752_v46 }
 0x160   :  { %v1391_v55 = vpack.c.bf16 %v856_v47, %v856_v47  ;;  %v1423_v56 = vpack.c.bf16 %v888_v48, %v888_v48  ;;  %v857_v57 = vmax.f32 %v793_v49, 0.0  ;;  %v889_v58 = vmax.f32 %v825_v50, 0.0 }
 0x161   :  { %v1389_v59 = vpack.c.bf16 %v854_v51, %v854_v51  ;;  %v1421_v60 = vpack.c.bf16 %v886_v52, %v886_v52  ;;  %v855_v61 = vmax.f32 %v791_v53, 0.0  ;;  %v887_v62 = vmax.f32 %v823_v54, 0.0 }
 0x162   :  { %1177 = vst.msk [vmem:[#allocation10 + $0x68] sm:$0xf] %vm1150_vm1, %v1391_v55  ;;  %1209 = vst.msk [vmem:[#allocation10 + $0xe8] sm:$0xf] %vm1150_vm1, %v1423_v56  ;;  %v1392_v1 = vpack.c.bf16 %v857_v57, %v857_v57  ;;  %v1424_v2 = vpack.c.bf16 %v889_v58, %v889_v58  ;;  %v725_v3 = vmul.f32 %v1494_v63, %v1813_v33 }
 0x163   :  { %v757_v4 = vmul.f32 %v1526_v0, %v1813_v33  ;;  %1175 = vst.msk [vmem:[#allocation10 + $0x60] sm:$0xf] %vm1150_vm1, %v1389_v59  ;;  %1207 = vst.msk [vmem:[#allocation10 + $0xe0] sm:$0xf] %vm1150_vm1, %v1421_v60  ;;  %v1390_v7 = vpack.c.bf16 %v855_v61, %v855_v61  ;;  %v1422_v8 = vpack.c.bf16 %v887_v62, %v887_v62 }
 0x164   :  { %v723_v9 = vmul.f32 %v1813_v33, %v545_v5  ;;  %v755_v10 = vmul.f32 %v1813_v33, %v673_v6  ;;  %1178 = vst.msk [vmem:[#allocation10 + $0x6c] sm:$0xf] %vm1150_vm1, %v1392_v1  ;;  %1210 = vst.msk [vmem:[#allocation10 + $0xec] sm:$0xf] %vm1150_vm1, %v1424_v2  ;;  %v796_v13 = vadd.f32 %v1815_v35, %v725_v3 }
 0x165   :  { %v828_v14 = vadd.f32 %v1815_v35, %v757_v4  ;;  %v726_v15 = vmul.f32 %v1495_v11, %v1813_v33  ;;  %v758_v16 = vmul.f32 %v1527_v12, %v1813_v33  ;;  %1176 = vst.msk [vmem:[#allocation10 + $0x64] sm:$0xf] %vm1150_vm1, %v1390_v7  ;;  %1208 = vst.msk [vmem:[#allocation10 + $0xe4] sm:$0xf] %vm1150_vm1, %v1422_v8 }
 0x166   :  { %v794_v19 = vadd.f32 %v1815_v35, %v723_v9  ;;  %v826_v20 = vadd.f32 %v1815_v35, %v755_v10  ;;  %v724_v21 = vmul.f32 %v1813_v33, %v548_v17  ;;  %v756_v22 = vmul.f32 %v1813_v33, %v676_v18 }
 0x167   :  { %v860_v23 = vmax.f32 %v796_v13, 0.0  ;;  %v892_v24 = vmax.f32 %v828_v14, 0.0  ;;  %v797_v25 = vadd.f32 %v1815_v35, %v726_v15  ;;  %v829_v26 = vadd.f32 %v1815_v35, %v758_v16 }
 0x168   :  { %v858_v27 = vmax.f32 %v794_v19, 0.0  ;;  %v890_v28 = vmax.f32 %v826_v20, 0.0  ;;  %v795_v29 = vadd.f32 %v1815_v35, %v724_v21  ;;  %v827_v30 = vadd.f32 %v1815_v35, %v756_v22 }
 0x169   :  { %v1395_v31 = vpack.c.bf16 %v860_v23, %v860_v23  ;;  %v1427_v32 = vpack.c.bf16 %v892_v24, %v892_v24  ;;  %v861_v34 = vmax.f32 %v797_v25, 0.0  ;;  %v893_v36 = vmax.f32 %v829_v26, 0.0 }
 0x16a   :  { %v1393_v37 = vpack.c.bf16 %v858_v27, %v858_v27  ;;  %v1425_v33 = vpack.c.bf16 %v890_v28, %v890_v28  ;;  %v859_v38 = vmax.f32 %v795_v29, 0.0  ;;  %v891_v39 = vmax.f32 %v827_v30, 0.0 }
 0x16b   :  { %1181 = vst.msk [vmem:[#allocation10 + $0x78] sm:$0xf] %vm1150_vm1, %v1395_v31  ;;  %1213 = vst.msk [vmem:[#allocation10 + $0xf8] sm:$0xf] %vm1150_vm1, %v1427_v32  ;;  %v1396_v40 = vpack.c.bf16 %v861_v34, %v861_v34  ;;  %v1428_v41 = vpack.c.bf16 %v893_v36, %v893_v36 }
 0x16c   :  { %1179 = vst.msk [vmem:[#allocation10 + $0x70] sm:$0xf] %vm1150_vm1, %v1393_v37  ;;  %1211 = vst.msk [vmem:[#allocation10 + $0xf0] sm:$0xf] %vm1150_vm1, %v1425_v33  ;;  %v1394_v35 = vpack.c.bf16 %v859_v38, %v859_v38  ;;  %v1426_v42 = vpack.c.bf16 %v891_v39, %v891_v39 }
 0x16d   :  { %1182 = vst.msk [vmem:[#allocation10 + $0x7c] sm:$0xf] %vm1150_vm1, %v1396_v40  ;;  %1214 = vst.msk [vmem:[#allocation10 + $0xfc] sm:$0xf] %vm1150_vm1, %v1428_v41 }
 0x16e   :  { %1180 = vst.msk [vmem:[#allocation10 + $0x74] sm:$0xf] %vm1150_vm1, %v1394_v35  ;;  %1212 = vst.msk [vmem:[#allocation10 + $0xf4] sm:$0xf] %vm1150_vm1, %v1426_v42 }
 0x16f   :  { %1669 = shalt.err (!%p1666_p8)
}
 0x170   :  { %s1670_s17 = scalar_lea.hbm %s2028_s4, 4096 }
 0x171   :  { %p1671_p9 = scmp.ne.s32.totalorder %s2028_s4, %s1670_s17  ;;  %p1674_p10 = scmp.lt.u32.totalorder %s1670_s17, %s2028_s4 }
 0x173   :  { %p1676_p11 = pnand %p1674_p10, %p1671_p9 }
 0x175   :  { %1679 = shalt.err (!%p1676_p11)
}
 0x176   :  { %1226 = dma.vmem_to_hbm [thread:$0]  %s1221_s13, 4096, %s2028_s4, [#allocation4], %s1690_s27, %s1690_s27, %s1691_s28  }
 0x177   :  { %1686 = dma.done.wait [#allocation4], 4096  }
 0x178   :  { %1687 = vsyncadd [#allocation4], 4294963200 }
 0x179   :  { %1230 = vsyncpa [#allocation3], 1 }
 0x17a   :  { %1231 = vsyncpa [#allocation6], 1 }
 0x17b   :  { %1232 = vsyncpa [#allocation9], 1 }
 0x17c   :  { %1233 = vsyncpa [#allocation4], 1 }

// kernel: bottleneck_forward.4
= control target key start
LH: loop header
LB: loop body
LE: loop exit
PB: predicated region body
PF: predicated region fallthrough
CT: control target
= control target key end

     0   :  { %9 = vsyncpa [#allocation3], 0  ;;  %s862_s0 = inlined_call_operand.hbm [shape: bf16[128,72], index: 0, kind: input, shape index: {}]   ;;  %s863_s1 = inlined_call_operand.hbm [shape: bf16[72,8], index: 1, kind: input, shape index: {}]   ;;  %s864_s2 = inlined_call_operand.hbm [shape: f32[1,8], index: 2, kind: input, shape index: {}]   ;;  %s865_s3 = inlined_call_operand.hbm [shape: f32[1,8], index: 3, kind: input, shape index: {}]   ;;  %s866_s4 = inlined_call_operand.hbm [shape: bf16[128,8], index: 4, kind: output, shape index: {}]  }
   0x1   :  { %10 = vsyncpa [#allocation6], 0 }
   0x2   :  { %11 = vsyncpa [#allocation9], 0 }
   0x3   :  { %12 = vsyncpa [#allocation4], 0  ;;  %s694_s15 = smov [#allocation5]   ;;  %s695_s17 = smov [#allocation2]  }
   0x4   :  { %s30_s16 = sshll.u32 %s694_s15, 4  ;;  %s18_s18 = sshll.u32 %s695_s17, 4  ;;  %s31_s16 = int_to_ptr.vmem [resolvable:$true] %s30_s16  ;;  %s726_s18 = int_to_ptr.vmem [resolvable:$true] %s18_s18 }
   0x5   :  { %s576_s21 = scalar_lea.hbm %s863_s1, 576 }
   0x6   :  { %p577_p0 = scmp.ne.s32.totalorder %s863_s1, %s576_s21  ;;  %p580_p1 = scmp.lt.u32.totalorder %s576_s21, %s863_s1 }
   0x8   :  { %p582_p2 = pnand %p580_p1, %p577_p0 }
   0xa   :  { %585 = shalt.err (!%p582_p2)
}
   0xb   :  { %s586_s26 = scalar_lea.vmem %s31_s16, 576  ;;  %p591_p4 = scmp.lt.s32.totalorder %s31_s16, %s31_s16 }
   0xc   :  { %p587_p3 = scmp.ne.s32.totalorder %s31_s16, %s586_s26  ;;  %p592_p5 = scmp.lt.s32.totalorder %s586_s26, %s586_s26 }
   0xe   :  { %p593_p6 = por %p592_p5, %p591_p4 }
  0x10   :  { %p594_p7 = pnand %p593_p6, %p587_p3 }
  0x12   :  { %597 = shalt.err (!%p594_p7)
}
  0x13   :  { %s696_s27 = smov 64   ;;  %s697_s28 = smov 4  }
  0x14   :  { %36 = dma.hbm_to_vmem [thread:$0]  %s863_s1, 576, %s31_s16, [#allocation6], %s696_s27, %s696_s27, %s697_s28  }
  0x15   :  { %s598_s7 = scalar_lea.hbm %s862_s0, 1024 }
  0x16   :  { %p599_p8 = scmp.ne.s32.totalorder %s862_s0, %s598_s7  ;;  %p602_p9 = scmp.lt.u32.totalorder %s598_s7, %s862_s0 }
  0x18   :  { %p604_p10 = pnand %p602_p9, %p599_p8 }
  0x1a   :  { %607 = shalt.err (!%p604_p10)
}
  0x1b   :  { %s608_s12 = scalar_lea.vmem %s726_s18, 1024  ;;  %p613_p12 = scmp.lt.s32.totalorder %s726_s18, %s726_s18 }
  0x1c   :  { %p609_p11 = scmp.ne.s32.totalorder %s726_s18, %s608_s12  ;;  %p614_p13 = scmp.lt.s32.totalorder %s608_s12, %s608_s12 }
  0x1e   :  { %p615_p0 = por %p614_p13, %p613_p12 }
  0x20   :  { %p616_p1 = pnand %p615_p0, %p609_p11 }
  0x22   :  { %619 = shalt.err (!%p616_p1)
}
  0x23   :  { %24 = dma.hbm_to_vmem [thread:$0]  %s862_s0, 1024, %s726_s18, [#allocation3], %s696_s27, %s696_s27, %s697_s28  }
  0x24   :  { %s698_s14 = smov [#allocation7]   ;;  %s699_s16 = smov [#allocation8]  }
  0x25   :  { %s43_s15 = sshll.u32 %s698_s14, 4  ;;  %s53_s17 = sshll.u32 %s699_s16, 4  ;;  %s44_s15 = int_to_ptr.vmem [resolvable:$true] %s43_s15  ;;  %s54_s17 = int_to_ptr.vmem [resolvable:$true] %s53_s17 }
  0x26   :  { %s620_s21 = scalar_lea.hbm %s864_s2, 16 }
  0x27   :  { %p621_p2 = scmp.ne.s32.totalorder %s864_s2, %s620_s21  ;;  %p624_p3 = scmp.lt.u32.totalorder %s620_s21, %s864_s2 }
  0x29   :  { %p626_p4 = pnand %p624_p3, %p621_p2 }
  0x2b   :  { %629 = shalt.err (!%p626_p4)
}
  0x2c   :  { %s630_s0 = scalar_lea.vmem %s44_s15, 16  ;;  %s634_s18 = scalar_lea.vmem %s44_s15, 32 }
  0x2d   :  { %p631_p5 = scmp.ne.s32.totalorder %s44_s15, %s630_s0  ;;  %p635_p6 = scmp.lt.s32.totalorder %s44_s15, %s44_s15 }
  0x2e   :  { %p636_p7 = scmp.lt.s32.totalorder %s634_s18, %s630_s0 }
  0x30   :  { %p637_p8 = por %p636_p7, %p635_p6 }
  0x32   :  { %p638_p9 = pnand %p637_p8, %p631_p5 }
  0x34   :  { %641 = shalt.err (!%p638_p9)
}
  0x35   :  { %46 = dma.hbm_to_vmem [thread:$0]  %s864_s2, 16, %s44_s15, [#allocation6]  }
  0x36   :  { %s642_s6 = scalar_lea.hbm %s865_s3, 16 }
  0x37   :  { %p643_p10 = scmp.ne.s32.totalorder %s865_s3, %s642_s6  ;;  %p646_p11 = scmp.lt.u32.totalorder %s642_s6, %s865_s3 }
  0x39   :  { %p648_p12 = pnand %p646_p11, %p643_p10 }
  0x3b   :  { %651 = shalt.err (!%p648_p12)
}
  0x3c   :  { %s652_s11 = scalar_lea.vmem %s54_s17, 16  ;;  %s656_s12 = scalar_lea.vmem %s54_s17, 32 }
  0x3d   :  { %p653_p13 = scmp.ne.s32.totalorder %s54_s17, %s652_s11  ;;  %p657_p0 = scmp.lt.s32.totalorder %s54_s17, %s54_s17 }
  0x3e   :  { %p658_p1 = scmp.lt.s32.totalorder %s656_s12, %s652_s11 }
  0x40   :  { %p659_p2 = por %p658_p1, %p657_p0 }
  0x42   :  { %p660_p3 = pnand %p659_p2, %p653_p13 }
  0x44   :  { %663 = shalt.err (!%p660_p3)
}
  0x45   :  { %56 = dma.hbm_to_vmem [thread:$0]  %s865_s3, 16, %s54_s17, [#allocation9]  }
  0x46   :  { %686 = dma.done.wait [#allocation3], 1024  }
  0x47   :  { %687 = vsyncadd [#allocation3], 4294966272 }
  0x48   :  { %688 = dma.done.wait [#allocation6], 592  }
  0x49   :  { %689 = vsyncadd [#allocation6], 4294966704 }
  0x4a   :  { %690 = dma.done.wait [#allocation9], 16  }
  0x4b   :  { %691 = vsyncadd [#allocation9], 4294967280  ;;  %v563_v0 = vld [vmem:[#allocation5] sm:$0xff]   ;;  %v564_v1 = vld [vmem:[#allocation5 + $0x8] sm:$0xff]   ;;  %vm162_vm0 = vcmask 588800   ;;  %vm187_vm1 = vcmask 1043456  }
  0x4c   :  { %518 = vmatprep.subr.bf16.mxu0 %v563_v0  ;;  %544 = vmatprep.subr.bf16.mxu1 %v563_v0  ;;  %v565_v2 = vld [vmem:[#allocation5 + $0x10] sm:$0xff]   ;;  %v568_v3 = vld [vmem:[#allocation2] sm:$0xff]   ;;  %v566_v5 = vld [vmem:[#allocation5 + $0x18] sm:$0xff]   ;;  %vm414_vm2 = vcmask 60416   ;;  %s700_s3 = smov [#allocation10]  }
  0x4d   :  { %519 = vmatpush3.bf16.msra.mxu0 %v563_v0  ;;  %549 = vmatpush3.bf16.msra.mxu1 %v563_v0  ;;  %v569_v4 = vld [vmem:[#allocation2 + $0x20] sm:$0xff]   ;;  %v570_v8 = vld [vmem:[#allocation2 + $0x8] sm:$0xff]   ;;  %v572_v10 = vld [vmem:[#allocation2 + $0x10] sm:$0xff]   ;;  %s436_s13 = sshll.u32 %s700_s3, 4  ;;  %s437_s13 = int_to_ptr.vmem [resolvable:$true] %s436_s13 }
  0x4e   :  { %520 = vmatprep.subr.bf16.mxu0 %v564_v1  ;;  %545 = vmatprep.subr.bf16.mxu1 %v564_v1  ;;  %v567_v6 = vld [vmem:[#allocation5 + $0x20] ss:$0 sps:$4 sm:$0xff]   ;;  %v571_v9 = vld [vmem:[#allocation2 + $0x28] sm:$0xff]   ;;  %v573_v11 = vld [vmem:[#allocation2 + $0x30] sm:$0xff]   ;;  %s664_s14 = scalar_lea.vmem %s437_s13, 1024  ;;  %p669_p5 = scmp.lt.s32.totalorder %s437_s13, %s437_s13 }
  0x4f   :  { %528 = vmatprep.mubr.msk.bf16.mxu0 %vm162_vm0, %v568_v3  ;;  %536 = vmatprep.mubr.msk.bf16.mxu1 %vm162_vm0, %v569_v4  ;;  %v189_v7 = vsel %vm187_vm1, %v567_v6, 0  ;;  %v574_v12 = vld [vmem:[#allocation2 + $0x18] sm:$0xff]   ;;  %v795_v14 = vld [vmem:[#allocation7] ss:$0 sm:$0xff]  ;;  %v797_v16 = vld [vmem:[#allocation8] ss:$0 sm:$0xff]  ;;  %p665_p4 = scmp.ne.s32.totalorder %s437_s13, %s664_s14  ;;  %p670_p6 = scmp.lt.s32.totalorder %s664_s14, %s664_s14 }
  0x50   :  { %v575_v13 = vld [vmem:[#allocation2 + $0x38] sm:$0xff]  }
  0x51   :  { %521 = vmatpush3.bf16.msra.mxu0 %v564_v1  ;;  %550 = vmatpush3.bf16.msra.mxu1 %v564_v1  ;;  %p671_p7 = por %p670_p6, %p669_p5 }
  0x52   :  { %522 = vmatprep.subr.bf16.mxu0 %v565_v2  ;;  %546 = vmatprep.subr.bf16.mxu1 %v565_v2 }
  0x53   :  { %p672_p8 = pnand %p671_p7, %p665_p4 }
  0x55   :  { %523 = vmatpush3.bf16.msra.mxu0 %v565_v2  ;;  %551 = vmatpush3.bf16.msra.mxu1 %v565_v2 }
  0x56   :  { %524 = vmatprep.subr.bf16.mxu0 %v566_v5  ;;  %547 = vmatprep.subr.bf16.mxu1 %v566_v5 }
  0x59   :  { %525 = vmatpush3.bf16.msra.mxu0 %v566_v5  ;;  %552 = vmatpush3.bf16.msra.mxu1 %v566_v5 }
  0x5a   :  { %554 = vmatprep.subr.msk.bf16.mxu0 %vm187_vm1, %v567_v6  ;;  %555 = vmatprep.subr.msk.bf16.mxu1 %vm187_vm1, %v567_v6 }
  0x5d   :  { %527 = vmatpush3.bf16.msra.mxu0 %v189_v7  ;;  %553 = vmatpush3.bf16.msra.mxu1 %v189_v7 }
  0x60   :  { %529 = vmatmul.mubr.msk.bf16.vlgmr.msra.gmra.mrb[0].mxu0 %vm162_vm0, %v570_v8  ;;  %537 = vmatmul.mubr.msk.bf16.vlgmr.msra.gmra.mrb[0].mxu1 %vm162_vm0, %v571_v9 }
  0x61   :  { %532 = vmatprep.mubr.msk.bf16.mxu0 %vm162_vm0, %v572_v10  ;;  %540 = vmatprep.mubr.msk.bf16.mxu1 %vm162_vm0, %v573_v11 }
  0x68   :  { %533 = vmatmul.mubr.msk.bf16.gmra.mrb[4].mxu0 %vm162_vm0, %v574_v12  ;;  %541 = vmatmul.mubr.msk.bf16.gmra.mrb[4].mxu1 %vm162_vm0, %v575_v13 }
 0x133   :  { %v530_v15 = vpop.f32.mrb[0].mxu0  ;;  %v538_v17 = vpop.f32.mrb[0].mxu1 }
 0x134   :  { %v297_v18 = vmul.f32 %v530_v15, %v795_v14  ;;  %v305_v19 = vmul.f32 %v538_v17, %v795_v14  ;;  %v225_v20 = vpop.f32.mrb[1].mxu0  ;;  %v257_v21 = vpop.f32.mrb[1].mxu1 }
 0x135   :  { %v295_v22 = vmul.f32 %v795_v14, %v225_v20  ;;  %v303_v23 = vmul.f32 %v795_v14, %v257_v21  ;;  %v531_v24 = vpop.f32.mrb[2].mxu0  ;;  %v539_v25 = vpop.f32.mrb[2].mxu1 }
 0x136   :  { %v320_v26 = vadd.f32 %v797_v16, %v297_v18  ;;  %v328_v27 = vadd.f32 %v797_v16, %v305_v19  ;;  %v298_v28 = vmul.f32 %v531_v24, %v795_v14  ;;  %v306_v29 = vmul.f32 %v539_v25, %v795_v14  ;;  %v228_v30 = vpop.f32.mrb[3].mxu0  ;;  %v260_v31 = vpop.f32.mrb[3].mxu1 }
 0x137   :  { %v318_v32 = vadd.f32 %v797_v16, %v295_v22  ;;  %v326_v33 = vadd.f32 %v797_v16, %v303_v23  ;;  %v296_v34 = vmul.f32 %v795_v14, %v228_v30  ;;  %v304_v35 = vmul.f32 %v795_v14, %v260_v31 }
 0x138   :  { %v336_v36 = vmax.f32 %v320_v26, 0.0  ;;  %v344_v37 = vmax.f32 %v328_v27, 0.0  ;;  %v321_v38 = vadd.f32 %v797_v16, %v298_v28  ;;  %v329_v39 = vadd.f32 %v797_v16, %v306_v29 }
 0x139   :  { %v334_v40 = vmax.f32 %v318_v32, 0.0  ;;  %v342_v41 = vmax.f32 %v326_v33, 0.0  ;;  %v319_v42 = vadd.f32 %v797_v16, %v296_v34  ;;  %v327_v43 = vadd.f32 %v797_v16, %v304_v35 }
 0x13a   :  { %v491_v44 = vpack.c.bf16 %v336_v36, %v336_v36  ;;  %v499_v45 = vpack.c.bf16 %v344_v37, %v344_v37  ;;  %v337_v46 = vmax.f32 %v321_v38, 0.0  ;;  %v345_v47 = vmax.f32 %v329_v39, 0.0 }
 0x13b   :  { %v489_v48 = vpack.c.bf16 %v334_v40, %v334_v40  ;;  %v497_v49 = vpack.c.bf16 %v342_v41, %v342_v41  ;;  %v335_v50 = vmax.f32 %v319_v42, 0.0  ;;  %v343_v51 = vmax.f32 %v327_v43, 0.0  ;;  %v534_v52 = vpop.f32.mrb[4].mxu0  ;;  %v542_v53 = vpop.f32.mrb[4].mxu1 }
 0x13c   :  { %417 = vst.msk [vmem:[#allocation10 + $0x8] sm:$0xf] %vm414_vm2, %v491_v44  ;;  %425 = vst.msk [vmem:[#allocation10 + $0x28] sm:$0xf] %vm414_vm2, %v499_v45  ;;  %v492_v54 = vpack.c.bf16 %v337_v46, %v337_v46  ;;  %v500_v55 = vpack.c.bf16 %v345_v47, %v345_v47  ;;  %v301_v56 = vmul.f32 %v534_v52, %v795_v14  ;;  %v241_v58 = vpop.f32.mrb[5].mxu0  ;;  %v273_v59 = vpop.f32.mrb[5].mxu1 }
 0x13d   :  { %v309_v57 = vmul.f32 %v542_v53, %v795_v14  ;;  %415 = vst.msk [vmem:[#allocation10] sm:$0xf] %vm414_vm2, %v489_v48  ;;  %423 = vst.msk [vmem:[#allocation10 + $0x20] sm:$0xf] %vm414_vm2, %v497_v49  ;;  %v490_v60 = vpack.c.bf16 %v335_v50, %v335_v50  ;;  %v498_v61 = vpack.c.bf16 %v343_v51, %v343_v51  ;;  %v535_v0 = vpop.f32.mrb[6].mxu0  ;;  %v543_v1 = vpop.f32.mrb[6].mxu1 }
 0x13e   :  { %v299_v62 = vmul.f32 %v795_v14, %v241_v58  ;;  %v307_v63 = vmul.f32 %v795_v14, %v273_v59  ;;  %418 = vst.msk [vmem:[#allocation10 + $0xc] sm:$0xf] %vm414_vm2, %v492_v54  ;;  %426 = vst.msk [vmem:[#allocation10 + $0x2c] sm:$0xf] %vm414_vm2, %v500_v55  ;;  %v324_v2 = vadd.f32 %v797_v16, %v301_v56  ;;  %v244_v6 = vpop.f32.mrb[7].mxu0  ;;  %v276_v7 = vpop.f32.mrb[7].mxu1 }
 0x13f   :  { %v332_v3 = vadd.f32 %v797_v16, %v309_v57  ;;  %v302_v4 = vmul.f32 %v535_v0, %v795_v14  ;;  %v310_v5 = vmul.f32 %v543_v1, %v795_v14  ;;  %416 = vst.msk [vmem:[#allocation10 + $0x4] sm:$0xf] %vm414_vm2, %v490_v60  ;;  %424 = vst.msk [vmem:[#allocation10 + $0x24] sm:$0xf] %vm414_vm2, %v498_v61 }
 0x140   :  { %v322_v8 = vadd.f32 %v797_v16, %v299_v62  ;;  %v330_v9 = vadd.f32 %v797_v16, %v307_v63  ;;  %v300_v10 = vmul.f32 %v795_v14, %v244_v6  ;;  %v308_v11 = vmul.f32 %v795_v14, %v276_v7 }
 0x141   :  { %v340_v12 = vmax.f32 %v324_v2, 0.0  ;;  %v348_v13 = vmax.f32 %v332_v3, 0.0  ;;  %v325_v15 = vadd.f32 %v797_v16, %v302_v4  ;;  %v333_v17 = vadd.f32 %v797_v16, %v310_v5 }
 0x142   :  { %v338_v18 = vmax.f32 %v322_v8, 0.0  ;;  %v346_v19 = vmax.f32 %v330_v9, 0.0  ;;  %v323_v20 = vadd.f32 %v797_v16, %v300_v10  ;;  %v331_v21 = vadd.f32 %v797_v16, %v308_v11 }
 0x143   :  { %v495_v22 = vpack.c.bf16 %v340_v12, %v340_v12  ;;  %v503_v23 = vpack.c.bf16 %v348_v13, %v348_v13  ;;  %v341_v24 = vmax.f32 %v325_v15, 0.0  ;;  %v349_v25 = vmax.f32 %v333_v17, 0.0 }
 0x144   :  { %v493_v26 = vpack.c.bf16 %v338_v18, %v338_v18  ;;  %v501_v14 = vpack.c.bf16 %v346_v19, %v346_v19  ;;  %v339_v27 = vmax.f32 %v323_v20, 0.0  ;;  %v347_v28 = vmax.f32 %v331_v21, 0.0 }
 0x145   :  { %421 = vst.msk [vmem:[#allocation10 + $0x18] sm:$0xf] %vm414_vm2, %v495_v22  ;;  %429 = vst.msk [vmem:[#allocation10 + $0x38] sm:$0xf] %vm414_vm2, %v503_v23  ;;  %v496_v29 = vpack.c.bf16 %v341_v24, %v341_v24  ;;  %v504_v30 = vpack.c.bf16 %v349_v25, %v349_v25 }
 0x146   :  { %419 = vst.msk [vmem:[#allocation10 + $0x10] sm:$0xf] %vm414_vm2, %v493_v26  ;;  %427 = vst.msk [vmem:[#allocation10 + $0x30] sm:$0xf] %vm414_vm2, %v501_v14  ;;  %v494_v16 = vpack.c.bf16 %v339_v27, %v339_v27  ;;  %v502_v31 = vpack.c.bf16 %v347_v28, %v347_v28 }
 0x147   :  { %422 = vst.msk [vmem:[#allocation10 + $0x1c] sm:$0xf] %vm414_vm2, %v496_v29  ;;  %430 = vst.msk [vmem:[#allocation10 + $0x3c] sm:$0xf] %vm414_vm2, %v504_v30 }
 0x148   :  { %420 = vst.msk [vmem:[#allocation10 + $0x14] sm:$0xf] %vm414_vm2, %v494_v16  ;;  %428 = vst.msk [vmem:[#allocation10 + $0x34] sm:$0xf] %vm414_vm2, %v502_v31 }
 0x149   :  { %675 = shalt.err (!%p672_p8)
}
 0x14a   :  { %s676_s17 = scalar_lea.hbm %s866_s4, 1024 }
 0x14b   :  { %p677_p9 = scmp.ne.s32.totalorder %s866_s4, %s676_s17  ;;  %p680_p10 = scmp.lt.u32.totalorder %s676_s17, %s866_s4 }
 0x14d   :  { %p682_p11 = pnand %p680_p10, %p677_p9 }
 0x14f   :  { %685 = shalt.err (!%p682_p11)
}
 0x150   :  { %442 = dma.vmem_to_hbm [thread:$0]  %s437_s13, 1024, %s866_s4, [#allocation4], %s696_s27, %s696_s27, %s697_s28  }
 0x151   :  { %692 = dma.done.wait [#allocation4], 1024  }
 0x152   :  { %693 = vsyncadd [#allocation4], 4294966272 }
 0x153   :  { %446 = vsyncpa [#allocation3], 1 }
 0x154   :  { %447 = vsyncpa [#allocation6], 1 }
 0x155   :  { %448 = vsyncpa [#allocation9], 1 }
 0x156   :  { %449 = vsyncpa [#allocation4], 1 }

// kernel: bottleneck_forward.5
= control target key start
LH: loop header
LB: loop body
LE: loop exit
PB: predicated region body
PF: predicated region fallthrough
CT: control target
= control target key end

     0   :  { %13 = vsyncpa [#allocation3], 0  ;;  %s1286_s0 = inlined_call_operand.hbm [shape: bf16[128,8], index: 0, kind: input, shape index: {}]   ;;  %s1287_s1 = inlined_call_operand.hbm [shape: bf16[8,32], index: 1, kind: input, shape index: {}]   ;;  %s1288_s2 = inlined_call_operand.hbm [shape: f32[1,32], index: 2, kind: input, shape index: {}]   ;;  %s1289_s3 = inlined_call_operand.hbm [shape: f32[1,32], index: 3, kind: input, shape index: {}]   ;;  %s1290_s4 = inlined_call_operand.hbm [shape: bf16[128,16], index: 4, kind: input, shape index: {}]   ;;  %s1291_s5 = inlined_call_operand.hbm [shape: bf16[16,32], index: 5, kind: input, shape index: {}]   ;;  %s1292_s6 = inlined_call_operand.hbm [shape: f32[1,32], index: 6, kind: input, shape index: {}]   ;;  %s1293_s7 = inlined_call_operand.hbm [shape: f32[1,32], index: 7, kind: input, shape index: {}]   ;;  %s1294_s8 = inlined_call_operand.hbm [shape: f32[128,32], index: 8, kind: output, shape index: {}]  }
   0x1   :  { %14 = vsyncpa [#allocation6], 0 }
   0x2   :  { %15 = vsyncpa [#allocation9], 0 }
   0x3   :  { %16 = vsyncpa [#allocation12], 0 }
   0x4   :  { %17 = vsyncpa [#allocation15], 0 }
   0x5   :  { %18 = vsyncpa [#allocation4], 0  ;;  %s993_s27 = smov [#allocation5]   ;;  %s994_s29 = smov [#allocation8]  }
   0x6   :  { %s37_s28 = sshll.u32 %s993_s27, 4  ;;  %s57_s30 = sshll.u32 %s994_s29, 4  ;;  %s38_s28 = int_to_ptr.vmem [resolvable:$true] %s37_s28  ;;  %s58_s30 = int_to_ptr.vmem [resolvable:$true] %s57_s30 }
   0x7   :  { %s783_s11 = scalar_lea.hbm %s1287_s1, 64 }
   0x8   :  { %p784_p0 = scmp.ne.s32.totalorder %s1287_s1, %s783_s11  ;;  %p787_p1 = scmp.lt.u32.totalorder %s783_s11, %s1287_s1 }
   0xa   :  { %p789_p2 = pnand %p787_p1, %p784_p0 }
   0xc   :  { %792 = shalt.err (!%p789_p2)
}
   0xd   :  { %s793_s16 = scalar_lea.vmem %s38_s28, 64  ;;  %p798_p4 = scmp.lt.s32.totalorder %s38_s28, %s38_s28 }
   0xe   :  { %p794_p3 = scmp.ne.s32.totalorder %s38_s28, %s793_s16  ;;  %p799_p5 = scmp.lt.s32.totalorder %s793_s16, %s793_s16 }
  0x10   :  { %p800_p6 = por %p799_p5, %p798_p4 }
  0x12   :  { %p801_p7 = pnand %p800_p6, %p794_p3 }
  0x14   :  { %804 = shalt.err (!%p801_p7)
}
  0x15   :  { %40 = dma.hbm_to_vmem [thread:$0]  %s1287_s1, 64, %s38_s28, [#allocation6]  }
  0x16   :  { %s805_s21 = scalar_lea.hbm %s1289_s3, 16 }
  0x17   :  { %p806_p8 = scmp.ne.s32.totalorder %s1289_s3, %s805_s21  ;;  %p809_p9 = scmp.lt.u32.totalorder %s805_s21, %s1289_s3 }
  0x19   :  { %p811_p10 = pnand %p809_p9, %p806_p8 }
  0x1b   :  { %814 = shalt.err (!%p811_p10)
}
  0x1c   :  { %s815_s26 = scalar_lea.vmem %s58_s30, 16  ;;  %s819_s27 = scalar_lea.vmem %s58_s30, 32 }
  0x1d   :  { %p816_p11 = scmp.ne.s32.totalorder %s58_s30, %s815_s26  ;;  %p820_p12 = scmp.lt.s32.totalorder %s58_s30, %s58_s30 }
  0x1e   :  { %p821_p13 = scmp.lt.s32.totalorder %s819_s27, %s815_s26 }
  0x20   :  { %p822_p0 = por %p821_p13, %p820_p12 }
  0x22   :  { %p823_p1 = pnand %p822_p0, %p816_p11 }
  0x24   :  { %826 = shalt.err (!%p823_p1)
}
  0x25   :  { %60 = dma.hbm_to_vmem [thread:$0]  %s1289_s3, 16, %s58_s30, [#allocation9]  }
  0x26   :  { %s995_s29 = smov [#allocation11]   ;;  %s996_s10 = smov [#allocation2]  }
  0x27   :  { %s78_s9 = sshll.u32 %s995_s29, 4  ;;  %s24_s11 = sshll.u32 %s996_s10, 4  ;;  %s79_s9 = int_to_ptr.vmem [resolvable:$true] %s78_s9  ;;  %s1075_s11 = int_to_ptr.vmem [resolvable:$true] %s24_s11 }
  0x28   :  { %s827_s14 = scalar_lea.hbm %s1291_s5, 128 }
  0x29   :  { %p828_p2 = scmp.ne.s32.totalorder %s1291_s5, %s827_s14  ;;  %p831_p3 = scmp.lt.u32.totalorder %s827_s14, %s1291_s5 }
  0x2b   :  { %p833_p4 = pnand %p831_p3, %p828_p2 }
  0x2d   :  { %836 = shalt.err (!%p833_p4)
}
  0x2e   :  { %s837_s3 = scalar_lea.vmem %s79_s9, 128  ;;  %p842_p6 = scmp.lt.s32.totalorder %s79_s9, %s79_s9 }
  0x2f   :  { %p838_p5 = scmp.ne.s32.totalorder %s79_s9, %s837_s3  ;;  %p843_p7 = scmp.lt.s32.totalorder %s837_s3, %s837_s3 }
  0x31   :  { %p844_p8 = por %p843_p7, %p842_p6 }
  0x33   :  { %p845_p9 = pnand %p844_p8, %p838_p5 }
  0x35   :  { %848 = shalt.err (!%p845_p9)
}
  0x36   :  { %s997_s30 = smov 64   ;;  %s998_s19 = smov 4  }
  0x37   :  { %84 = dma.hbm_to_vmem [thread:$0]  %s1291_s5, 128, %s79_s9, [#allocation12], %s997_s30, %s997_s30, %s998_s19  }
  0x38   :  { %s849_s24 = scalar_lea.hbm %s1286_s0, 1024 }
  0x39   :  { %p850_p10 = scmp.ne.s32.totalorder %s1286_s0, %s849_s24  ;;  %p853_p11 = scmp.lt.u32.totalorder %s849_s24, %s1286_s0 }
  0x3b   :  { %p855_p12 = pnand %p853_p11, %p850_p10 }
  0x3d   :  { %858 = shalt.err (!%p855_p12)
}
  0x3e   :  { %s859_s28 = scalar_lea.vmem %s1075_s11, 1024  ;;  %p864_p0 = scmp.lt.s32.totalorder %s1075_s11, %s1075_s11 }
  0x3f   :  { %p860_p13 = scmp.ne.s32.totalorder %s1075_s11, %s859_s28  ;;  %p865_p1 = scmp.lt.s32.totalorder %s859_s28, %s859_s28 }
  0x41   :  { %p866_p2 = por %p865_p1, %p864_p0 }
  0x43   :  { %p867_p3 = pnand %p866_p2, %p860_p13 }
  0x45   :  { %870 = shalt.err (!%p867_p3)
}
  0x46   :  { %30 = dma.hbm_to_vmem [thread:$0]  %s1286_s0, 1024, %s1075_s11, [#allocation3], %s997_s30, %s997_s30, %s998_s19  }
  0x47   :  { %s999_s9 = smov [#allocation7]   ;;  %s1000_s12 = smov [#allocation10]  }
  0x48   :  { %s47_s10 = sshll.u32 %s999_s9, 4  ;;  %s66_s13 = sshll.u32 %s1000_s12, 4  ;;  %s48_s10 = int_to_ptr.vmem [resolvable:$true] %s47_s10  ;;  %s1112_s13 = int_to_ptr.vmem [resolvable:$true] %s66_s13 }
  0x49   :  { %s871_s16 = scalar_lea.hbm %s1288_s2, 16 }
  0x4a   :  { %p872_p4 = scmp.ne.s32.totalorder %s1288_s2, %s871_s16  ;;  %p875_p5 = scmp.lt.u32.totalorder %s871_s16, %s1288_s2 }
  0x4c   :  { %p877_p6 = pnand %p875_p5, %p872_p4 }
  0x4e   :  { %880 = shalt.err (!%p877_p6)
}
  0x4f   :  { %s881_s0 = scalar_lea.vmem %s48_s10, 16  ;;  %s885_s11 = scalar_lea.vmem %s48_s10, 32 }
  0x50   :  { %p882_p7 = scmp.ne.s32.totalorder %s48_s10, %s881_s0  ;;  %p886_p8 = scmp.lt.s32.totalorder %s48_s10, %s48_s10 }
  0x51   :  { %p887_p9 = scmp.lt.s32.totalorder %s885_s11, %s881_s0 }
  0x53   :  { %p888_p10 = por %p887_p9, %p886_p8 }
  0x55   :  { %p889_p11 = pnand %p888_p10, %p882_p7 }
  0x57   :  { %892 = shalt.err (!%p889_p11)
}
  0x58   :  { %50 = dma.hbm_to_vmem [thread:$0]  %s1288_s2, 16, %s48_s10, [#allocation6]  }
  0x59   :  { %s893_s25 = scalar_lea.hbm %s1290_s4, 1024 }
  0x5a   :  { %p894_p12 = scmp.ne.s32.totalorder %s1290_s4, %s893_s25  ;;  %p897_p13 = scmp.lt.u32.totalorder %s893_s25, %s1290_s4 }
  0x5c   :  { %p899_p0 = pnand %p897_p13, %p894_p12 }
  0x5e   :  { %902 = shalt.err (!%p899_p0)
}
  0x5f   :  { %s903_s5 = scalar_lea.vmem %s1112_s13, 1024  ;;  %p908_p2 = scmp.lt.s32.totalorder %s1112_s13, %s1112_s13 }
  0x60   :  { %p904_p1 = scmp.ne.s32.totalorder %s1112_s13, %s903_s5  ;;  %p909_p3 = scmp.lt.s32.totalorder %s903_s5, %s903_s5 }
  0x62   :  { %p910_p4 = por %p909_p3, %p908_p2 }
  0x64   :  { %p911_p5 = pnand %p910_p4, %p904_p1 }
  0x66   :  { %914 = shalt.err (!%p911_p5)
}
  0x67   :  { %72 = dma.hbm_to_vmem [thread:$0]  %s1290_s4, 1024, %s1112_s13, [#allocation9], %s997_s30, %s997_s30, %s998_s19  }
  0x68   :  { %s1001_s9 = smov [#allocation13]   ;;  %s1002_s12 = smov [#allocation14]  }
  0x69   :  { %s91_s10 = sshll.u32 %s1001_s9, 4  ;;  %s101_s14 = sshll.u32 %s1002_s12, 4  ;;  %s92_s10 = int_to_ptr.vmem [resolvable:$true] %s91_s10  ;;  %s102_s14 = int_to_ptr.vmem [resolvable:$true] %s101_s14 }
  0x6a   :  { %s915_s17 = scalar_lea.hbm %s1292_s6, 16 }
  0x6b   :  { %p916_p6 = scmp.ne.s32.totalorder %s1292_s6, %s915_s17  ;;  %p919_p7 = scmp.lt.u32.totalorder %s915_s17, %s1292_s6 }
  0x6d   :  { %p921_p8 = pnand %p919_p7, %p916_p6 }
  0x6f   :  { %924 = shalt.err (!%p921_p8)
}
  0x70   :  { %s925_s4 = scalar_lea.vmem %s92_s10, 16  ;;  %s929_s30 = scalar_lea.vmem %s92_s10, 32 }
  0x71   :  { %p926_p9 = scmp.ne.s32.totalorder %s92_s10, %s925_s4  ;;  %p930_p10 = scmp.lt.s32.totalorder %s92_s10, %s92_s10 }
  0x72   :  { %p931_p11 = scmp.lt.s32.totalorder %s929_s30, %s925_s4 }
  0x74   :  { %p932_p12 = por %p931_p11, %p930_p10 }
  0x76   :  { %p933_p13 = pnand %p932_p12, %p926_p9 }
  0x78   :  { %936 = shalt.err (!%p933_p13)
}
  0x79   :  { %94 = dma.hbm_to_vmem [thread:$0]  %s1292_s6, 16, %s92_s10, [#allocation12]  }
  0x7a   :  { %s937_s22 = scalar_lea.hbm %s1293_s7, 16 }
  0x7b   :  { %p938_p0 = scmp.ne.s32.totalorder %s1293_s7, %s937_s22  ;;  %p941_p1 = scmp.lt.u32.totalorder %s937_s22, %s1293_s7 }
  0x7d   :  { %p943_p2 = pnand %p941_p1, %p938_p0 }
  0x7f   :  { %946 = shalt.err (!%p943_p2)
}
  0x80   :  { %s947_s27 = scalar_lea.vmem %s102_s14, 16  ;;  %s951_s1 = scalar_lea.vmem %s102_s14, 32 }
  0x81   :  { %p948_p3 = scmp.ne.s32.totalorder %s102_s14, %s947_s27  ;;  %p952_p4 = scmp.lt.s32.totalorder %s102_s14, %s102_s14 }
  0x82   :  { %p953_p5 = scmp.lt.s32.totalorder %s951_s1, %s947_s27 }
  0x84   :  { %p954_p6 = por %p953_p5, %p952_p4 }
  0x86   :  { %p955_p7 = pnand %p954_p6, %p948_p3 }
  0x88   :  { %958 = shalt.err (!%p955_p7)
}
  0x89   :  { %104 = dma.hbm_to_vmem [thread:$0]  %s1293_s7, 16, %s102_s14, [#allocation15]  }
  0x8a   :  { %981 = dma.done.wait [#allocation3], 1024  }
  0x8b   :  { %982 = vsyncadd [#allocation3], 4294966272 }
  0x8c   :  { %983 = dma.done.wait [#allocation6], 80  }
  0x8d   :  { %984 = vsyncadd [#allocation6], 4294967216 }
  0x8e   :  { %985 = dma.done.wait [#allocation9], 1040  }
  0x8f   :  { %986 = vsyncadd [#allocation9], 4294966256 }
  0x90   :  { %987 = dma.done.wait [#allocation12], 144  }
  0x91   :  { %988 = vsyncadd [#allocation12], 4294967152 }
  0x92   :  { %989 = dma.done.wait [#allocation15], 16  }
  0x93   :  { %990 = vsyncadd [#allocation15], 4294967280  ;;  %vm212_vm0 = vcmask 1043456   ;;  %vm187_vm1 = vcmask 64512   ;;  %v146_v0 = vld [vmem:[#allocation5] sm:$0xf] }
  0x94   :  { %752 = vmatprep.subr.msk.bf16.mxu0 %vm212_vm0, %v146_v0  ;;  %v214_v1 = vsel %vm212_vm0, %v146_v0, 0  ;;  %v766_v2 = vld [vmem:[#allocation11] sm:$0xff]   ;;  %v767_v3 = vld [vmem:[#allocation2] sm:$0xff]   ;;  %vm423_vm2 = vcmask 130048   ;;  %v770_v6 = vld [vmem:[#allocation10 + $0x8] sm:$0xff]   ;;  %vm623_vm3 = vcmask 261120  }
  0x95   :  { %717 = vmatpush3.bf16.msra.mxu0 %v214_v1  ;;  %734 = vmatprep.subr.bf16.mxu1 %v766_v2  ;;  %v768_v4 = vld [vmem:[#allocation2 + $0x8] sm:$0xff]   ;;  %v771_v7 = vld [vmem:[#allocation2 + $0x10] sm:$0xff]   ;;  %v773_v8 = vld [vmem:[#allocation10 + $0x10] sm:$0xff]   ;;  %s1003_s7 = smov [#allocation16]  }
  0x96   :  { %718 = vmatprep.mubr.msk.bf16.mxu0 %vm187_vm1, %v767_v3  ;;  %735 = vmatpush3.bf16.msra.mxu1 %v766_v2  ;;  %v769_v5 = vld [vmem:[#allocation10] sm:$0xff]   ;;  %v772_v9 = vld [vmem:[#allocation2 + $0x18] sm:$0xff]   ;;  %v775_v10 = vld [vmem:[#allocation2 + $0x20] sm:$0xff]   ;;  %s645_s5 = sshll.u32 %s1003_s7, 4  ;;  %s646_s5 = int_to_ptr.vmem [resolvable:$true] %s645_s5 }
  0x97   :  { %736 = vmatprep.mubr.msk.bf16.mxu1 %vm423_vm2, %v769_v5  ;;  %v774_v11 = vld [vmem:[#allocation10 + $0x18] sm:$0xff]   ;;  %v777_v12 = vld [vmem:[#allocation10 + $0x20] sm:$0xff]   ;;  %v779_v14 = vld [vmem:[#allocation2 + $0x30] sm:$0xff]   ;;  %s959_s2 = scalar_lea.vmem %s646_s5, 2048  ;;  %p964_p9 = scmp.lt.s32.totalorder %s646_s5, %s646_s5 }
  0x98   :  { %719 = vmatmul.mubr.msk.bf16.vlgmr.msra.gmra.mrb[0].mxu0 %vm187_vm1, %v768_v4  ;;  %v776_v13 = vld [vmem:[#allocation2 + $0x28] sm:$0xff]   ;;  %v778_v15 = vld [vmem:[#allocation10 + $0x28] sm:$0xff]   ;;  %v781_v16 = vld [vmem:[#allocation10 + $0x30] sm:$0xff]   ;;  %p960_p8 = scmp.ne.s32.totalorder %s646_s5, %s959_s2  ;;  %p965_p10 = scmp.lt.s32.totalorder %s959_s2, %s959_s2 }
  0x99   :  { %737 = vmatmul.mubr.msk.bf16.vlgmr.msra.gmra.mrb[0].mxu1 %vm423_vm2, %v770_v6  ;;  %722 = vmatprep.mubr.msk.bf16.mxu0 %vm187_vm1, %v771_v7  ;;  %v780_v17 = vld [vmem:[#allocation2 + $0x38] sm:$0xff]   ;;  %v782_v18 = vld [vmem:[#allocation10 + $0x38] sm:$0xff]   ;;  %v1190_v22 = vld [vmem:[#allocation13] ss:$0 sm:$0xff] }
  0x9a   :  { %740 = vmatprep.mubr.msk.bf16.mxu1 %vm423_vm2, %v773_v8  ;;  %v1186_v19 = vld [vmem:[#allocation7] ss:$0 sm:$0xff]  ;;  %v1188_v21 = vld [vmem:[#allocation8] ss:$0 sm:$0xff]  ;;  %v1194_v28 = vld [vmem:[#allocation14] ss:$0 sm:$0xff]  ;;  %p966_p11 = por %p965_p10, %p964_p9 }
  0x9c   :  { %p967_p12 = pnand %p966_p11, %p960_p8 }
  0xa0   :  { %723 = vmatmul.mubr.msk.bf16.gmra.mrb[4].mxu0 %vm187_vm1, %v772_v9 }
  0xa1   :  { %726 = vmatprep.mubr.msk.bf16.mxu0 %vm187_vm1, %v775_v10  ;;  %741 = vmatmul.mubr.msk.bf16.gmra.mrb[4].mxu1 %vm423_vm2, %v774_v11 }
  0xa2   :  { %744 = vmatprep.mubr.msk.bf16.mxu1 %vm423_vm2, %v777_v12 }
  0xa8   :  { %727 = vmatmul.mubr.msk.bf16.gmra.mrb[8].mxu0 %vm187_vm1, %v776_v13 }
  0xa9   :  { %730 = vmatprep.mubr.msk.bf16.mxu0 %vm187_vm1, %v779_v14  ;;  %745 = vmatmul.mubr.msk.bf16.gmra.mrb[8].mxu1 %vm423_vm2, %v778_v15 }
  0xaa   :  { %748 = vmatprep.mubr.msk.bf16.mxu1 %vm423_vm2, %v781_v16 }
  0xb0   :  { %731 = vmatmul.mubr.msk.bf16.gmra.mrb[12].mxu0 %vm187_vm1, %v780_v17 }
  0xb1   :  { %749 = vmatmul.mubr.msk.bf16.gmra.mrb[12].mxu1 %vm423_vm2, %v782_v18 }
 0x16b   :  { %v720_v20 = vpop.f32.mrb[0].mxu0 }
 0x16c   :  { %v322_v23 = vmul.f32 %v720_v20, %v1186_v19  ;;  %v250_v24 = vpop.f32.mrb[1].mxu0  ;;  %v738_v27 = vpop.f32.mrb[0].mxu1 }
 0x16d   :  { %v320_v25 = vmul.f32 %v1186_v19, %v250_v24  ;;  %v721_v26 = vpop.f32.mrb[2].mxu0  ;;  %v554_v31 = vmul.f32 %v738_v27, %v1190_v22  ;;  %v482_v33 = vpop.f32.mrb[1].mxu1 }
 0x16e   :  { %v345_v29 = vadd.f32 %v1188_v21, %v322_v23  ;;  %v323_v30 = vmul.f32 %v721_v26, %v1186_v19  ;;  %v253_v32 = vpop.f32.mrb[3].mxu0  ;;  %v552_v36 = vmul.f32 %v1190_v22, %v482_v33  ;;  %v739_v37 = vpop.f32.mrb[2].mxu1 }
 0x16f   :  { %v343_v34 = vadd.f32 %v1188_v21, %v320_v25  ;;  %v321_v35 = vmul.f32 %v1186_v19, %v253_v32  ;;  %v577_v39 = vadd.f32 %v1194_v28, %v554_v31  ;;  %v555_v40 = vmul.f32 %v739_v37, %v1190_v22  ;;  %v485_v41 = vpop.f32.mrb[3].mxu1 }
 0x170   :  { %v346_v38 = vadd.f32 %v1188_v21, %v323_v30  ;;  %v575_v43 = vadd.f32 %v1194_v28, %v552_v36  ;;  %v553_v44 = vmul.f32 %v1190_v22, %v485_v41 }
 0x171   :  { %v344_v42 = vadd.f32 %v1188_v21, %v321_v35  ;;  %v593_v45 = vadd.f32 %v577_v39, %v345_v29  ;;  %v578_v46 = vadd.f32 %v1194_v28, %v555_v40 }
 0x172   :  { %v591_v47 = vadd.f32 %v575_v43, %v343_v34  ;;  %v576_v48 = vadd.f32 %v1194_v28, %v553_v44 }
 0x173   :  { %v724_v49 = vpop.f32.mrb[4].mxu0  ;;  %v609_v50 = vmax.f32 %v593_v45, 0.0  ;;  %v594_v51 = vadd.f32 %v578_v46, %v346_v38 }
 0x174   :  { %v326_v52 = vmul.f32 %v724_v49, %v1186_v19  ;;  %v266_v53 = vpop.f32.mrb[5].mxu0  ;;  %v607_v54 = vmax.f32 %v591_v47, 0.0  ;;  %v592_v55 = vadd.f32 %v576_v48, %v344_v42  ;;  %v742_v58 = vpop.f32.mrb[4].mxu1 }
 0x175   :  { %v324_v56 = vmul.f32 %v1186_v19, %v266_v53  ;;  %v725_v57 = vpop.f32.mrb[6].mxu0  ;;  %626 = vst.msk [vmem:[#allocation16 + $0x10] sm:$0xff] %vm623_vm3, %v609_v50  ;;  %v610_v59 = vmax.f32 %v594_v51, 0.0  ;;  %v558_v62 = vmul.f32 %v742_v58, %v1190_v22  ;;  %v498_v0 = vpop.f32.mrb[5].mxu1 }
 0x176   :  { %v349_v60 = vadd.f32 %v1188_v21, %v326_v52  ;;  %v327_v61 = vmul.f32 %v725_v57, %v1186_v19  ;;  %v269_v63 = vpop.f32.mrb[7].mxu0  ;;  %624 = vst.msk [vmem:[#allocation16] sm:$0xff] %vm623_vm3, %v607_v54  ;;  %v608_v1 = vmax.f32 %v592_v55, 0.0  ;;  %v556_v4 = vmul.f32 %v1190_v22, %v498_v0  ;;  %v743_v5 = vpop.f32.mrb[6].mxu1 }
 0x177   :  { %v347_v2 = vadd.f32 %v1188_v21, %v324_v56  ;;  %v325_v3 = vmul.f32 %v1186_v19, %v269_v63  ;;  %627 = vst.msk [vmem:[#allocation16 + $0x18] sm:$0xff] %vm623_vm3, %v610_v59  ;;  %v581_v7 = vadd.f32 %v1194_v28, %v558_v62  ;;  %v559_v8 = vmul.f32 %v743_v5, %v1190_v22  ;;  %v501_v9 = vpop.f32.mrb[7].mxu1 }
 0x178   :  { %v350_v6 = vadd.f32 %v1188_v21, %v327_v61  ;;  %625 = vst.msk [vmem:[#allocation16 + $0x8] sm:$0xff] %vm623_vm3, %v608_v1  ;;  %v579_v11 = vadd.f32 %v1194_v28, %v556_v4  ;;  %v557_v12 = vmul.f32 %v1190_v22, %v501_v9 }
 0x179   :  { %v348_v10 = vadd.f32 %v1188_v21, %v325_v3  ;;  %v597_v13 = vadd.f32 %v581_v7, %v349_v60  ;;  %v582_v14 = vadd.f32 %v1194_v28, %v559_v8 }
 0x17a   :  { %v595_v15 = vadd.f32 %v579_v11, %v347_v2  ;;  %v580_v16 = vadd.f32 %v1194_v28, %v557_v12 }
 0x17b   :  { %v728_v17 = vpop.f32.mrb[8].mxu0  ;;  %v613_v18 = vmax.f32 %v597_v13, 0.0  ;;  %v598_v20 = vadd.f32 %v582_v14, %v350_v6 }
 0x17c   :  { %v330_v23 = vmul.f32 %v728_v17, %v1186_v19  ;;  %v282_v24 = vpop.f32.mrb[9].mxu0  ;;  %v611_v25 = vmax.f32 %v595_v15, 0.0  ;;  %v596_v26 = vadd.f32 %v580_v16, %v348_v10  ;;  %v746_v30 = vpop.f32.mrb[8].mxu1 }
 0x17d   :  { %v328_v27 = vmul.f32 %v1186_v19, %v282_v24  ;;  %v729_v29 = vpop.f32.mrb[10].mxu0  ;;  %630 = vst.msk [vmem:[#allocation16 + $0x30] sm:$0xff] %vm623_vm3, %v613_v18  ;;  %v614_v31 = vmax.f32 %v598_v20, 0.0  ;;  %v562_v34 = vmul.f32 %v746_v30, %v1190_v22  ;;  %v514_v36 = vpop.f32.mrb[9].mxu1 }
 0x17e   :  { %v353_v32 = vadd.f32 %v1188_v21, %v330_v23  ;;  %v331_v33 = vmul.f32 %v729_v29, %v1186_v19  ;;  %v285_v35 = vpop.f32.mrb[11].mxu0  ;;  %628 = vst.msk [vmem:[#allocation16 + $0x20] sm:$0xff] %vm623_vm3, %v611_v25  ;;  %v612_v37 = vmax.f32 %v596_v26, 0.0  ;;  %v560_v40 = vmul.f32 %v1190_v22, %v514_v36  ;;  %v747_v41 = vpop.f32.mrb[10].mxu1 }
 0x17f   :  { %v351_v38 = vadd.f32 %v1188_v21, %v328_v27  ;;  %v329_v39 = vmul.f32 %v1186_v19, %v285_v35  ;;  %631 = vst.msk [vmem:[#allocation16 + $0x38] sm:$0xff] %vm623_vm3, %v614_v31  ;;  %v585_v43 = vadd.f32 %v1194_v28, %v562_v34  ;;  %v563_v44 = vmul.f32 %v747_v41, %v1190_v22  ;;  %v517_v45 = vpop.f32.mrb[11].mxu1 }
 0x180   :  { %v354_v42 = vadd.f32 %v1188_v21, %v331_v33  ;;  %629 = vst.msk [vmem:[#allocation16 + $0x28] sm:$0xff] %vm623_vm3, %v612_v37  ;;  %v583_v47 = vadd.f32 %v1194_v28, %v560_v40  ;;  %v561_v48 = vmul.f32 %v1190_v22, %v517_v45 }
 0x181   :  { %v352_v46 = vadd.f32 %v1188_v21, %v329_v39  ;;  %v601_v49 = vadd.f32 %v585_v43, %v353_v32  ;;  %v586_v50 = vadd.f32 %v1194_v28, %v563_v44 }
 0x182   :  { %v599_v51 = vadd.f32 %v583_v47, %v351_v38  ;;  %v584_v52 = vadd.f32 %v1194_v28, %v561_v48 }
 0x183   :  { %v732_v53 = vpop.f32.mrb[12].mxu0  ;;  %v617_v54 = vmax.f32 %v601_v49, 0.0  ;;  %v602_v55 = vadd.f32 %v586_v50, %v354_v42 }
 0x184   :  { %v334_v56 = vmul.f32 %v732_v53, %v1186_v19  ;;  %v298_v57 = vpop.f32.mrb[13].mxu0  ;;  %v615_v58 = vmax.f32 %v599_v51, 0.0  ;;  %v600_v59 = vadd.f32 %v584_v52, %v352_v46  ;;  %v750_v62 = vpop.f32.mrb[12].mxu1 }
 0x185   :  { %v332_v60 = vmul.f32 %v1186_v19, %v298_v57  ;;  %v733_v61 = vpop.f32.mrb[14].mxu0  ;;  %634 = vst.msk [vmem:[#allocation16 + $0x50] sm:$0xff] %vm623_vm3, %v617_v54  ;;  %v618_v63 = vmax.f32 %v602_v55, 0.0  ;;  %v566_v2 = vmul.f32 %v750_v62, %v1190_v22  ;;  %v530_v4 = vpop.f32.mrb[13].mxu1 }
 0x186   :  { %v357_v0 = vadd.f32 %v1188_v21, %v334_v56  ;;  %v335_v1 = vmul.f32 %v733_v61, %v1186_v19  ;;  %v301_v3 = vpop.f32.mrb[15].mxu0  ;;  %632 = vst.msk [vmem:[#allocation16 + $0x40] sm:$0xff] %vm623_vm3, %v615_v58  ;;  %v616_v5 = vmax.f32 %v600_v59, 0.0  ;;  %v564_v8 = vmul.f32 %v1190_v22, %v530_v4  ;;  %v751_v9 = vpop.f32.mrb[14].mxu1 }
 0x187   :  { %v355_v6 = vadd.f32 %v1188_v21, %v332_v60  ;;  %v333_v7 = vmul.f32 %v1186_v19, %v301_v3  ;;  %635 = vst.msk [vmem:[#allocation16 + $0x58] sm:$0xff] %vm623_vm3, %v618_v63  ;;  %v589_v11 = vadd.f32 %v1194_v28, %v566_v2  ;;  %v567_v12 = vmul.f32 %v751_v9, %v1190_v22  ;;  %v533_v13 = vpop.f32.mrb[15].mxu1 }
 0x188   :  { %v358_v10 = vadd.f32 %v1188_v21, %v335_v1  ;;  %633 = vst.msk [vmem:[#allocation16 + $0x48] sm:$0xff] %vm623_vm3, %v616_v5  ;;  %v587_v15 = vadd.f32 %v1194_v28, %v564_v8  ;;  %v565_v19 = vmul.f32 %v1190_v22, %v533_v13 }
 0x189   :  { %v356_v14 = vadd.f32 %v1188_v21, %v333_v7  ;;  %v605_v16 = vadd.f32 %v589_v11, %v357_v0  ;;  %v590_v17 = vadd.f32 %v1194_v28, %v567_v12 }
 0x18a   :  { %v603_v18 = vadd.f32 %v587_v15, %v355_v6  ;;  %v588_v20 = vadd.f32 %v1194_v28, %v565_v19 }
 0x18b   :  { %v621_v23 = vmax.f32 %v605_v16, 0.0  ;;  %v606_v24 = vadd.f32 %v590_v17, %v358_v10 }
 0x18c   :  { %v619_v25 = vmax.f32 %v603_v18, 0.0  ;;  %v604_v26 = vadd.f32 %v588_v20, %v356_v14 }
 0x18d   :  { %638 = vst.msk [vmem:[#allocation16 + $0x70] sm:$0xff] %vm623_vm3, %v621_v23  ;;  %v622_v27 = vmax.f32 %v606_v24, 0.0 }
 0x18e   :  { %636 = vst.msk [vmem:[#allocation16 + $0x60] sm:$0xff] %vm623_vm3, %v619_v25  ;;  %v620_v21 = vmax.f32 %v604_v26, 0.0 }
 0x18f   :  { %639 = vst.msk [vmem:[#allocation16 + $0x78] sm:$0xff] %vm623_vm3, %v622_v27 }
 0x190   :  { %637 = vst.msk [vmem:[#allocation16 + $0x68] sm:$0xff] %vm623_vm3, %v620_v21 }
 0x191   :  { %970 = shalt.err (!%p967_p12)
}
 0x192   :  { %s971_s10 = scalar_lea.hbm %s1294_s8, 2048 }
 0x193   :  { %p972_p13 = scmp.ne.s32.totalorder %s1294_s8, %s971_s10  ;;  %p975_p0 = scmp.lt.u32.totalorder %s971_s10, %s1294_s8 }
 0x195   :  { %p977_p1 = pnand %p975_p0, %p972_p13 }
 0x197   :  { %980 = shalt.err (!%p977_p1)
}
 0x198   :  { %s1004_s17 = smov 128   ;;  %s1005_s18 = smov 8  }
 0x199   :  { %651 = dma.vmem_to_hbm [thread:$0]  %s646_s5, 2048, %s1294_s8, [#allocation4], %s1004_s17, %s1004_s17, %s1005_s18  }
 0x19a   :  { %991 = dma.done.wait [#allocation4], 2048  }
 0x19b   :  { %992 = vsyncadd [#allocation4], 4294965248 }
 0x19c   :  { %655 = vsyncpa [#allocation3], 1 }
 0x19d   :  { %656 = vsyncpa [#allocation6], 1 }
 0x19e   :  { %657 = vsyncpa [#allocation9], 1 }
 0x19f   :  { %658 = vsyncpa [#allocation12], 1 }
 0x1a0   :  { %659 = vsyncpa [#allocation15], 1 }
 0x1a1   :  { %660 = vsyncpa [#allocation4], 1 }

</bundles_post_ra>
